<compile_context>
chip_gen: v6e
topology: v6e:2x2x1
jax: 0.10.0
libtpu: 0.0.40
codegen_flags: <defaults>
</compile_context>

<pallas_src>
import math
import jax
import jax.numpy as jnp
from jax.experimental import pallas as pl
from jax.experimental.pallas import tpu as pltpu

# small, forward-consistent shapes (scaled down from d_model=2048 / ff=8192)
D_MODEL = 32
NHEAD = 4
NUM_LAYERS = 2
DIM_FF = 64
NUM_CLASSES = 101
NUM_CLASSES_PAD = 128          # lane-dense classifier output
SEQ = 8
BATCH = 2
LN_EPS = 1e-5
HEAD_DIM = D_MODEL // NHEAD

# ------------------------------------------------------- slab row layout ----
# Everything is padded to 128 lanes and stacked along rows (sublanes); every
# piece starts at a row offset that is a multiple of 8.
LANES = 128
ROW_PE = 0                                   # (B*S, D)      rows [0, 16)
PE_ROWS = BATCH * SEQ                        # 16
LAYER_BASE = PE_ROWS                         # 16
OFF_WQKV = 0                                 # (D, 3D)
OFF_WO = D_MODEL                             # (D, D)
OFF_W1 = 2 * D_MODEL                         # (D, FF)
OFF_W2 = 3 * D_MODEL                         # (FF, D)
OFF_VEC = 3 * D_MODEL + DIM_FF               # (8, 128) bias / LN rows
LAYER_ROWS = 3 * D_MODEL + DIM_FF + 8        # 168
CLF_BASE = LAYER_BASE + NUM_LAYERS * LAYER_ROWS   # 352
OFF_CW1 = CLF_BASE                           # (D, D//2)
OFF_CW2 = CLF_BASE + D_MODEL                 # (D//2, 128)  (lane-padded)
OFF_CB = OFF_CW2 + D_MODEL // 2              # (2, 128): row0=cb1, row1=cb2(pad)
TOTAL_ROWS = ((OFF_CB + 2 + 7) // 8) * 8     # 408


# ---------------------------------------------------------------- kernel ----

def _layernorm(x, gamma, beta):
    # PyTorch LayerNorm: biased variance over last dim, eps=1e-5
    mu = jnp.mean(x, axis=-1, keepdims=True)
    var = jnp.mean((x - mu) ** 2, axis=-1, keepdims=True)
    return (x - mu) * jax.lax.rsqrt(var + LN_EPS) * gamma + beta


def fused_transformer_kernel(x_ref, slab_ref, out_ref):
    """Entire forward pass for the whole batch, fully resident in VMEM.

    x_ref:    (B*S, D) input embeddings (batch folded into matmul M dim).
    slab_ref: (TOTAL_ROWS, 128) packed constants (PE + all weights).
    out_ref:  (B, NUM_CLASSES_PAD) lane-padded logits.
    """
    B, S, H, DH, D, FF = BATCH, SEQ, NHEAD, HEAD_DIM, D_MODEL, DIM_FF

    # positional encoding add
    x = x_ref[...] + slab_ref[ROW_PE:ROW_PE + B * S, :D]          # (B*S, D)

    for layer in range(NUM_LAYERS):
        base = LAYER_BASE + layer * LAYER_ROWS
        wqkv = slab_ref[base + OFF_WQKV:base + OFF_WQKV + D, :3 * D]   # (D, 3D)
        wo = slab_ref[base + OFF_WO:base + OFF_WO + D, :D]             # (D, D)
        w1 = slab_ref[base + OFF_W1:base + OFF_W1 + D, :FF]            # (D, FF)
        w2 = slab_ref[base + OFF_W2:base + OFF_W2 + FF, :D]            # (FF, D)
        vecs = slab_ref[base + OFF_VEC:base + OFF_VEC + 8, :]          # (8, 128)
        bqkv = vecs[0:1, :3 * D]
        bo = vecs[1:2, :D]
        b1 = vecs[2:3, :FF]
        b2 = vecs[3:4, :D]
        ln1g, ln1b = vecs[4:5, :D], vecs[5:6, :D]
        ln2g, ln2b = vecs[6:7, :D], vecs[7:8, :D]

        # ---- fused QKV projection: one (B*S, D) @ (D, 3D) matmul ----
        # (1/sqrt(head_dim) is pre-folded into the Q weights/bias)
        qkv = jnp.dot(x, wqkv, preferred_element_type=jnp.float32) + bqkv
        q = qkv[:, :D]
        k = qkv[:, D:2 * D]
        v = qkv[:, 2 * D:3 * D]

        # ---- batched attention over all (batch, head) pairs ----
        def split_heads(t):
            return jnp.stack(
                [t[b * S:(b + 1) * S, h * DH:(h + 1) * DH]
                 for b in range(B) for h in range(H)],
                axis=0)                                           # (B*H, S, DH)

        qh, kh, vh = split_heads(q), split_heads(k), split_heads(v)

        scores = jnp.einsum('nsd,ntd->nst', qh, kh,
                            preferred_element_type=jnp.float32)  # (B*H, S, S)
        scores = scores - jnp.max(scores, axis=-1, keepdims=True)
        p = jnp.exp(scores)
        p = p * pl.reciprocal(jnp.sum(p, axis=-1, keepdims=True), approx=True)
        ctx_h = jnp.einsum('nst,ntd->nsd', p, vh,
                           preferred_element_type=jnp.float32)   # (B*H, S, DH)

        # back to (B*S, D): lane-concat heads, sublane-concat batch
        ctx = jnp.concatenate(
            [jnp.concatenate([ctx_h[b * H + h] for h in range(H)], axis=-1)
             for b in range(B)],
            axis=0)

        attn = jnp.dot(ctx, wo, preferred_element_type=jnp.float32) + bo
        # dropout = identity in eval mode; post-norm residual
        x = _layernorm(x + attn, ln1g, ln1b)

        # ---- FFN ----
        h1 = jnp.dot(x, w1, preferred_element_type=jnp.float32) + b1
        h1 = jnp.maximum(h1, 0.0)                                 # relu
        h2 = jnp.dot(h1, w2, preferred_element_type=jnp.float32) + b2
        x = _layernorm(x + h2, ln2g, ln2b)

    # ---- mean pool over sequence (per batch element) + classifier ----
    cw1 = slab_ref[OFF_CW1:OFF_CW1 + D, :D // 2]                  # (D, D//2)
    cw2 = slab_ref[OFF_CW2:OFF_CW2 + D // 2, :]                   # (D//2, 128)
    cvec = slab_ref[OFF_CB:OFF_CB + 2, :]                         # (2, 128)
    cb1 = cvec[0:1, :D // 2]
    cb2 = cvec[1:2, :]

    pooled = jnp.concatenate(
        [jnp.sum(x[b * S:(b + 1) * S, :], axis=0, keepdims=True) for b in range(B)],
        axis=0) * (1.0 / S)                                       # (B, D)

    h = jnp.dot(pooled, cw1, preferred_element_type=jnp.float32) + cb1
    h = jnp.maximum(h, 0.0)
    # dropout = identity in eval mode
    out_ref[...] = jnp.dot(h, cw2, preferred_element_type=jnp.float32) + cb2


# --------------------------------------------------------------- wrapper ----

@jax.jit
def transformer_forward(x, slab):
    B, S, D = x.shape
    x2d = x.reshape(B * S, D)                  # fold batch into matmul M dim
    logits_pad = pl.pallas_call(
        fused_transformer_kernel,
        out_shape=jax.ShapeDtypeStruct((B, NUM_CLASSES_PAD), jnp.float32),
        compiler_params=pltpu.CompilerParams(vmem_limit_bytes=32 * 1024 * 1024),
    )(x2d, slab)
    return logits_pad[:, :NUM_CLASSES]


# ------------------------------------------------------------------ setup ---

def make_positional_encoding(seq_len, d_model):
    position = jnp.arange(seq_len, dtype=jnp.float32)[:, None]
    div_term = jnp.exp(jnp.arange(0, d_model, 2, dtype=jnp.float32)
                       * (-math.log(10000.0) / d_model))
    pe = jnp.zeros((seq_len, d_model), jnp.float32)
    pe = pe.at[:, 0::2].set(jnp.sin(position * div_term))
    pe = pe.at[:, 1::2].set(jnp.cos(position * div_term))
    return pe


def init_params(key):
    """Weights in PyTorch (out_features, in_features) layout."""
    D, FF, C = D_MODEL, DIM_FF, NUM_CLASSES
    state = {"key": key}

    def nxt():
        state["key"], sub = jax.random.split(state["key"])
        return sub

    def w(shape, scale=0.05):
        return (scale * jax.random.normal(nxt(), shape)).astype(jnp.float32)

    layers = []
    for _ in range(NUM_LAYERS):
        layers.append(dict(
            wq=w((D, D)), bq=w((1, D), 0.01),
            wk=w((D, D)), bk=w((1, D), 0.01),
            wv=w((D, D)), bv=w((1, D), 0.01),
            wo=w((D, D)), bo=w((1, D), 0.01),
            ln1_g=jnp.ones((1, D), jnp.float32),
            ln1_b=jnp.zeros((1, D), jnp.float32),
            w1=w((FF, D)), b1=w((1, FF), 0.01),
            w2=w((D, FF)), b2=w((1, D), 0.01),
            ln2_g=jnp.ones((1, D), jnp.float32),
            ln2_b=jnp.zeros((1, D), jnp.float32),
        ))
    clf = dict(
        w1=w((D // 2, D)), b1=w((1, D // 2), 0.01),
        w2=w((C, D // 2)), b2=w((1, C), 0.01),
    )
    return layers, clf


def prepare_kernel_params(pe, layers, clf):
    """One-time weight prep (at init, not per forward): transpose to (in, out),
    fuse QKV, fold the attention scale into Wq/bq, lane-pad the classifier
    output, and pack EVERYTHING (incl. the positional encoding) into one
    lane-dense (TOTAL_ROWS, 128) f32 slab -> a single DMA per forward."""
    D, FF = D_MODEL, DIM_FF
    scale = 1.0 / math.sqrt(HEAD_DIM)

    slab = jnp.zeros((TOTAL_ROWS, LANES), jnp.float32)

    def put(s, row, a):
        a = jnp.asarray(a, jnp.float32)
        return s.at[row:row + a.shape[0], :a.shape[1]].set(a)

    pe2d = jnp.tile(pe, (BATCH, 1))                               # (B*S, D)
    slab = put(slab, ROW_PE, pe2d)

    for l, p in enumerate(layers):
        base = LAYER_BASE + l * LAYER_ROWS
        wq_scaled = p["wq"] * scale
        bq_scaled = p["bq"] * scale
        wqkv = jnp.concatenate([wq_scaled.T, p["wk"].T, p["wv"].T], axis=1)  # (D, 3D)
        bqkv = jnp.concatenate([bq_scaled, p["bk"], p["bv"]], axis=1)        # (1, 3D)

        slab = put(slab, base + OFF_WQKV, wqkv)
        slab = put(slab, base + OFF_WO, p["wo"].T)
        slab = put(slab, base + OFF_W1, p["w1"].T)
        slab = put(slab, base + OFF_W2, p["w2"].T)

        vecs = jnp.zeros((8, LANES), jnp.float32)
        vecs = vecs.at[0, :3 * D].set(bqkv[0])
        vecs = vecs.at[1, :D].set(p["bo"][0])
        vecs = vecs.at[2, :FF].set(p["b1"][0])
        vecs = vecs.at[3, :D].set(p["b2"][0])
        vecs = vecs.at[4, :D].set(p["ln1_g"][0])
        vecs = vecs.at[5, :D].set(p["ln1_b"][0])
        vecs = vecs.at[6, :D].set(p["ln2_g"][0])
        vecs = vecs.at[7, :D].set(p["ln2_b"][0])
        slab = put(slab, base + OFF_VEC, vecs)

    slab = put(slab, OFF_CW1, clf["w1"].T)                        # (D, D//2)
    slab = put(slab, OFF_CW2, clf["w2"].T)                        # (D//2, 101) -> padded lanes
    cb = jnp.zeros((2, LANES), jnp.float32)
    cb = cb.at[0, :D // 2].set(clf["b1"][0])
    cb = cb.at[1, :NUM_CLASSES].set(clf["b2"][0])
    slab = put(slab, OFF_CB, cb)

    return slab


if __name__ == "__main__":
    key = jax.random.PRNGKey(0)
    key, kx, kp = jax.random.split(key, 3)
    x = jax.random.normal(kx, (BATCH, SEQ, D_MODEL), jnp.float32)
    pe = make_positional_encoding(SEQ, D_MODEL)
    layers, clf = init_params(kp)
    slab = prepare_kernel_params(pe, layers, clf)

    out = transformer_forward(x, slab)
    out = jax.block_until_ready(out)

    assert out.shape == (BATCH, NUM_CLASSES), out.shape
    assert bool(jnp.all(jnp.isfinite(out)))
    print("KERNEL_OK")
</pallas_src>

<mosaic_0001>
module attributes {stable_mosaic.version = 11 : i64} {
  func.func @fused_transformer_kernel(%arg0: memref<16x32xf32, #tpu.memory_space<vmem>>, %arg1: memref<408x128xf32, #tpu.memory_space<vmem>>, %arg2: memref<2x128xf32, #tpu.memory_space<vmem>>) attributes {dimension_semantics = [], scalar_prefetch = 0 : i64, scratch_operands = 0 : i64, tpu.core_type = #tpu.core_type<tc>} {
    %c0 = arith.constant 0 : index
    %c0_0 = arith.constant 0 : index
    %0 = vector.load %arg0[%c0, %c0_0] : memref<16x32xf32, #tpu.memory_space<vmem>>, vector<16x32xf32>
    %c0_1 = arith.constant 0 : index
    %c0_2 = arith.constant 0 : index
    %1 = vector.load %arg1[%c0_1, %c0_2] : memref<408x128xf32, #tpu.memory_space<vmem>>, vector<16x32xf32>
    %2 = arith.addf %0, %1 : vector<16x32xf32>
    %c16 = arith.constant 16 : index
    %c0_3 = arith.constant 0 : index
    %3 = vector.load %arg1[%c16, %c0_3] : memref<408x128xf32, #tpu.memory_space<vmem>>, vector<32x96xf32>
    %c48 = arith.constant 48 : index
    %c0_4 = arith.constant 0 : index
    %4 = vector.load %arg1[%c48, %c0_4] : memref<408x128xf32, #tpu.memory_space<vmem>>, vector<32x32xf32>
    %c80 = arith.constant 80 : index
    %c0_5 = arith.constant 0 : index
    %5 = vector.load %arg1[%c80, %c0_5] : memref<408x128xf32, #tpu.memory_space<vmem>>, vector<32x64xf32>
    %c112 = arith.constant 112 : index
    %c0_6 = arith.constant 0 : index
    %6 = vector.load %arg1[%c112, %c0_6] : memref<408x128xf32, #tpu.memory_space<vmem>>, vector<64x32xf32>
    %c176 = arith.constant 176 : index
    %c0_7 = arith.constant 0 : index
    %7 = vector.load %arg1[%c176, %c0_7] : memref<408x128xf32, #tpu.memory_space<vmem>>, vector<8x128xf32>
    %8 = vector.extract_strided_slice %7 {offsets = [0, 0], sizes = [1, 96], strides = [1, 1]} : vector<8x128xf32> to vector<1x96xf32>
    %9 = vector.extract_strided_slice %7 {offsets = [1, 0], sizes = [1, 32], strides = [1, 1]} : vector<8x128xf32> to vector<1x32xf32>
    %10 = vector.extract_strided_slice %7 {offsets = [2, 0], sizes = [1, 64], strides = [1, 1]} : vector<8x128xf32> to vector<1x64xf32>
    %11 = vector.extract_strided_slice %7 {offsets = [3, 0], sizes = [1, 32], strides = [1, 1]} : vector<8x128xf32> to vector<1x32xf32>
    %12 = vector.extract_strided_slice %7 {offsets = [4, 0], sizes = [1, 32], strides = [1, 1]} : vector<8x128xf32> to vector<1x32xf32>
    %13 = vector.extract_strided_slice %7 {offsets = [5, 0], sizes = [1, 32], strides = [1, 1]} : vector<8x128xf32> to vector<1x32xf32>
    %14 = vector.extract_strided_slice %7 {offsets = [6, 0], sizes = [1, 32], strides = [1, 1]} : vector<8x128xf32> to vector<1x32xf32>
    %15 = vector.extract_strided_slice %7 {offsets = [7, 0], sizes = [1, 32], strides = [1, 1]} : vector<8x128xf32> to vector<1x32xf32>
    %cst = arith.constant dense<0.000000e+00> : vector<16x96xf32>
    %16 = tpu.matmul %2, %3, %cst {dimension_numbers = #tpu.dot_dimension_numbers<[1], [0], [0], [1], [0, 0, 1, 1], [], []>} : vector<16x32xf32>, vector<32x96xf32>, vector<16x96xf32> -> vector<16x96xf32>
    %17 = vector.broadcast %8 : vector<1x96xf32> to vector<16x96xf32>
    %18 = arith.addf %16, %17 : vector<16x96xf32>
    %19 = vector.extract_strided_slice %18 {offsets = [0, 0], sizes = [16, 32], strides = [1, 1]} : vector<16x96xf32> to vector<16x32xf32>
    %20 = vector.extract_strided_slice %18 {offsets = [0, 32], sizes = [16, 32], strides = [1, 1]} : vector<16x96xf32> to vector<16x32xf32>
    %21 = vector.extract_strided_slice %18 {offsets = [0, 64], sizes = [16, 32], strides = [1, 1]} : vector<16x96xf32> to vector<16x32xf32>
    %22 = vector.extract_strided_slice %19 {offsets = [0, 0], sizes = [8, 8], strides = [1, 1]} : vector<16x32xf32> to vector<8x8xf32>
    %23 = vector.extract_strided_slice %19 {offsets = [0, 8], sizes = [8, 8], strides = [1, 1]} : vector<16x32xf32> to vector<8x8xf32>
    %24 = vector.extract_strided_slice %19 {offsets = [0, 16], sizes = [8, 8], strides = [1, 1]} : vector<16x32xf32> to vector<8x8xf32>
    %25 = vector.extract_strided_slice %19 {offsets = [0, 24], sizes = [8, 8], strides = [1, 1]} : vector<16x32xf32> to vector<8x8xf32>
    %26 = vector.extract_strided_slice %19 {offsets = [8, 0], sizes = [8, 8], strides = [1, 1]} : vector<16x32xf32> to vector<8x8xf32>
    %27 = vector.extract_strided_slice %19 {offsets = [8, 8], sizes = [8, 8], strides = [1, 1]} : vector<16x32xf32> to vector<8x8xf32>
    %28 = vector.extract_strided_slice %19 {offsets = [8, 16], sizes = [8, 8], strides = [1, 1]} : vector<16x32xf32> to vector<8x8xf32>
    %29 = vector.extract_strided_slice %19 {offsets = [8, 24], sizes = [8, 8], strides = [1, 1]} : vector<16x32xf32> to vector<8x8xf32>
    %30 = vector.shape_cast %22 : vector<8x8xf32> to vector<1x8x8xf32>
    %31 = vector.shape_cast %23 : vector<8x8xf32> to vector<1x8x8xf32>
    %32 = vector.shape_cast %24 : vector<8x8xf32> to vector<1x8x8xf32>
    %33 = vector.shape_cast %25 : vector<8x8xf32> to vector<1x8x8xf32>
    %34 = vector.shape_cast %26 : vector<8x8xf32> to vector<1x8x8xf32>
    %35 = vector.shape_cast %27 : vector<8x8xf32> to vector<1x8x8xf32>
    %36 = vector.shape_cast %28 : vector<8x8xf32> to vector<1x8x8xf32>
    %37 = vector.shape_cast %29 : vector<8x8xf32> to vector<1x8x8xf32>
    %38 = tpu.concatenate %30, %31, %32, %33, %34, %35, %36, %37 in 0 : vector<1x8x8xf32>, vector<1x8x8xf32>, vector<1x8x8xf32>, vector<1x8x8xf32>, vector<1x8x8xf32>, vector<1x8x8xf32>, vector<1x8x8xf32>, vector<1x8x8xf32> -> vector<8x8x8xf32>
    %39 = vector.extract_strided_slice %20 {offsets = [0, 0], sizes = [8, 8], strides = [1, 1]} : vector<16x32xf32> to vector<8x8xf32>
    %40 = vector.extract_strided_slice %20 {offsets = [0, 8], sizes = [8, 8], strides = [1, 1]} : vector<16x32xf32> to vector<8x8xf32>
    %41 = vector.extract_strided_slice %20 {offsets = [0, 16], sizes = [8, 8], strides = [1, 1]} : vector<16x32xf32> to vector<8x8xf32>
    %42 = vector.extract_strided_slice %20 {offsets = [0, 24], sizes = [8, 8], strides = [1, 1]} : vector<16x32xf32> to vector<8x8xf32>
    %43 = vector.extract_strided_slice %20 {offsets = [8, 0], sizes = [8, 8], strides = [1, 1]} : vector<16x32xf32> to vector<8x8xf32>
    %44 = vector.extract_strided_slice %20 {offsets = [8, 8], sizes = [8, 8], strides = [1, 1]} : vector<16x32xf32> to vector<8x8xf32>
    %45 = vector.extract_strided_slice %20 {offsets = [8, 16], sizes = [8, 8], strides = [1, 1]} : vector<16x32xf32> to vector<8x8xf32>
    %46 = vector.extract_strided_slice %20 {offsets = [8, 24], sizes = [8, 8], strides = [1, 1]} : vector<16x32xf32> to vector<8x8xf32>
    %47 = vector.shape_cast %39 : vector<8x8xf32> to vector<1x8x8xf32>
    %48 = vector.shape_cast %40 : vector<8x8xf32> to vector<1x8x8xf32>
    %49 = vector.shape_cast %41 : vector<8x8xf32> to vector<1x8x8xf32>
    %50 = vector.shape_cast %42 : vector<8x8xf32> to vector<1x8x8xf32>
    %51 = vector.shape_cast %43 : vector<8x8xf32> to vector<1x8x8xf32>
    %52 = vector.shape_cast %44 : vector<8x8xf32> to vector<1x8x8xf32>
    %53 = vector.shape_cast %45 : vector<8x8xf32> to vector<1x8x8xf32>
    %54 = vector.shape_cast %46 : vector<8x8xf32> to vector<1x8x8xf32>
    %55 = tpu.concatenate %47, %48, %49, %50, %51, %52, %53, %54 in 0 : vector<1x8x8xf32>, vector<1x8x8xf32>, vector<1x8x8xf32>, vector<1x8x8xf32>, vector<1x8x8xf32>, vector<1x8x8xf32>, vector<1x8x8xf32>, vector<1x8x8xf32> -> vector<8x8x8xf32>
    %56 = vector.extract_strided_slice %21 {offsets = [0, 0], sizes = [8, 8], strides = [1, 1]} : vector<16x32xf32> to vector<8x8xf32>
    %57 = vector.extract_strided_slice %21 {offsets = [0, 8], sizes = [8, 8], strides = [1, 1]} : vector<16x32xf32> to vector<8x8xf32>
    %58 = vector.extract_strided_slice %21 {offsets = [0, 16], sizes = [8, 8], strides = [1, 1]} : vector<16x32xf32> to vector<8x8xf32>
    %59 = vector.extract_strided_slice %21 {offsets = [0, 24], sizes = [8, 8], strides = [1, 1]} : vector<16x32xf32> to vector<8x8xf32>
    %60 = vector.extract_strided_slice %21 {offsets = [8, 0], sizes = [8, 8], strides = [1, 1]} : vector<16x32xf32> to vector<8x8xf32>
    %61 = vector.extract_strided_slice %21 {offsets = [8, 8], sizes = [8, 8], strides = [1, 1]} : vector<16x32xf32> to vector<8x8xf32>
    %62 = vector.extract_strided_slice %21 {offsets = [8, 16], sizes = [8, 8], strides = [1, 1]} : vector<16x32xf32> to vector<8x8xf32>
    %63 = vector.extract_strided_slice %21 {offsets = [8, 24], sizes = [8, 8], strides = [1, 1]} : vector<16x32xf32> to vector<8x8xf32>
    %64 = vector.shape_cast %56 : vector<8x8xf32> to vector<1x8x8xf32>
    %65 = vector.shape_cast %57 : vector<8x8xf32> to vector<1x8x8xf32>
    %66 = vector.shape_cast %58 : vector<8x8xf32> to vector<1x8x8xf32>
    %67 = vector.shape_cast %59 : vector<8x8xf32> to vector<1x8x8xf32>
    %68 = vector.shape_cast %60 : vector<8x8xf32> to vector<1x8x8xf32>
    %69 = vector.shape_cast %61 : vector<8x8xf32> to vector<1x8x8xf32>
    %70 = vector.shape_cast %62 : vector<8x8xf32> to vector<1x8x8xf32>
    %71 = vector.shape_cast %63 : vector<8x8xf32> to vector<1x8x8xf32>
    %72 = tpu.concatenate %64, %65, %66, %67, %68, %69, %70, %71 in 0 : vector<1x8x8xf32>, vector<1x8x8xf32>, vector<1x8x8xf32>, vector<1x8x8xf32>, vector<1x8x8xf32>, vector<1x8x8xf32>, vector<1x8x8xf32>, vector<1x8x8xf32> -> vector<8x8x8xf32>
    "tpu.trace_start"() <{level = 10 : i32, message = "nsd,ntd->nst"}> : () -> ()
    %cst_8 = arith.constant dense<0.000000e+00> : vector<8x8x8xf32>
    %73 = tpu.matmul %38, %55, %cst_8 {dimension_numbers = #tpu.dot_dimension_numbers<[2], [2], [1], [1], [0, 0, 0, 1, 1, 1], [0], [0]>} : vector<8x8x8xf32>, vector<8x8x8xf32>, vector<8x8x8xf32> -> vector<8x8x8xf32>
    "tpu.trace_stop"() : () -> ()
    %cst_9 = arith.constant dense<0xFF800000> : vector<8x8xf32>
    %74 = vector.multi_reduction <maximumf>, %73, %cst_9 [2] : vector<8x8x8xf32> to vector<8x8xf32>
    %75 = vector.shape_cast %74 : vector<8x8xf32> to vector<8x8x1xf32>
    %76 = vector.broadcast %75 : vector<8x8x1xf32> to vector<8x8x8xf32>
    %77 = arith.subf %73, %76 : vector<8x8x8xf32>
    %78 = math.exp %77 : vector<8x8x8xf32>
    %cst_10 = arith.constant dense<0.000000e+00> : vector<8x8xf32>
    %79 = vector.multi_reduction <add>, %78, %cst_10 [2] : vector<8x8x8xf32> to vector<8x8xf32>
    %80 = vector.shape_cast %79 : vector<8x8xf32> to vector<8x8x1xf32>
    %81 = tpu.reciprocal %80 {approx = true} : vector<8x8x1xf32> -> vector<8x8x1xf32>
    %82 = vector.broadcast %81 : vector<8x8x1xf32> to vector<8x8x8xf32>
    %83 = arith.mulf %78, %82 : vector<8x8x8xf32>
    "tpu.trace_start"() <{level = 10 : i32, message = "nst,ntd->nsd"}> : () -> ()
    %cst_11 = arith.constant dense<0.000000e+00> : vector<8x8x8xf32>
    %84 = tpu.matmul %83, %72, %cst_11 {dimension_numbers = #tpu.dot_dimension_numbers<[2], [1], [1], [2], [0, 0, 0, 1, 1, 2], [0], [0]>} : vector<8x8x8xf32>, vector<8x8x8xf32>, vector<8x8x8xf32> -> vector<8x8x8xf32>
    "tpu.trace_stop"() : () -> ()
    %85 = vector.extract_strided_slice %84 {offsets = [0, 0, 0], sizes = [1, 8, 8], strides = [1, 1, 1]} : vector<8x8x8xf32> to vector<1x8x8xf32>
    %86 = vector.shape_cast %85 : vector<1x8x8xf32> to vector<8x8xf32>
    %87 = vector.extract_strided_slice %84 {offsets = [1, 0, 0], sizes = [1, 8, 8], strides = [1, 1, 1]} : vector<8x8x8xf32> to vector<1x8x8xf32>
    %88 = vector.shape_cast %87 : vector<1x8x8xf32> to vector<8x8xf32>
    %89 = vector.extract_strided_slice %84 {offsets = [2, 0, 0], sizes = [1, 8, 8], strides = [1, 1, 1]} : vector<8x8x8xf32> to vector<1x8x8xf32>
    %90 = vector.shape_cast %89 : vector<1x8x8xf32> to vector<8x8xf32>
    %91 = vector.extract_strided_slice %84 {offsets = [3, 0, 0], sizes = [1, 8, 8], strides = [1, 1, 1]} : vector<8x8x8xf32> to vector<1x8x8xf32>
    %92 = vector.shape_cast %91 : vector<1x8x8xf32> to vector<8x8xf32>
    %93 = tpu.concatenate %86, %88, %90, %92 in 1 : vector<8x8xf32>, vector<8x8xf32>, vector<8x8xf32>, vector<8x8xf32> -> vector<8x32xf32>
    %94 = vector.extract_strided_slice %84 {offsets = [4, 0, 0], sizes = [1, 8, 8], strides = [1, 1, 1]} : vector<8x8x8xf32> to vector<1x8x8xf32>
    %95 = vector.shape_cast %94 : vector<1x8x8xf32> to vector<8x8xf32>
    %96 = vector.extract_strided_slice %84 {offsets = [5, 0, 0], sizes = [1, 8, 8], strides = [1, 1, 1]} : vector<8x8x8xf32> to vector<1x8x8xf32>
    %97 = vector.shape_cast %96 : vector<1x8x8xf32> to vector<8x8xf32>
    %98 = vector.extract_strided_slice %84 {offsets = [6, 0, 0], sizes = [1, 8, 8], strides = [1, 1, 1]} : vector<8x8x8xf32> to vector<1x8x8xf32>
    %99 = vector.shape_cast %98 : vector<1x8x8xf32> to vector<8x8xf32>
    %100 = vector.extract_strided_slice %84 {offsets = [7, 0, 0], sizes = [1, 8, 8], strides = [1, 1, 1]} : vector<8x8x8xf32> to vector<1x8x8xf32>
    %101 = vector.shape_cast %100 : vector<1x8x8xf32> to vector<8x8xf32>
    %102 = tpu.concatenate %95, %97, %99, %101 in 1 : vector<8x8xf32>, vector<8x8xf32>, vector<8x8xf32>, vector<8x8xf32> -> vector<8x32xf32>
    %103 = tpu.concatenate %93, %102 in 0 : vector<8x32xf32>, vector<8x32xf32> -> vector<16x32xf32>
    %cst_12 = arith.constant dense<0.000000e+00> : vector<16x32xf32>
    %104 = tpu.matmul %103, %4, %cst_12 {dimension_numbers = #tpu.dot_dimension_numbers<[1], [0], [0], [1], [0, 0, 1, 1], [], []>} : vector<16x32xf32>, vector<32x32xf32>, vector<16x32xf32> -> vector<16x32xf32>
    %105 = vector.broadcast %9 : vector<1x32xf32> to vector<16x32xf32>
    %106 = arith.addf %104, %105 : vector<16x32xf32>
    %107 = arith.addf %2, %106 : vector<16x32xf32>
    %cst_13 = arith.constant dense<0.000000e+00> : vector<16xf32>
    %108 = vector.multi_reduction <add>, %107, %cst_13 [1] : vector<16x32xf32> to vector<16xf32>
    %109 = vector.shape_cast %108 : vector<16xf32> to vector<16x1xf32>
    %cst_14 = arith.constant 3.200000e+01 : f32
    %110 = vector.broadcast %cst_14 : f32 to vector<16x1xf32>
    %111 = arith.divf %109, %110 : vector<16x1xf32>
    %112 = vector.broadcast %111 : vector<16x1xf32> to vector<16x32xf32>
    %113 = arith.subf %107, %112 : vector<16x32xf32>
    %114 = arith.mulf %113, %113 : vector<16x32xf32>
    %cst_15 = arith.constant dense<0.000000e+00> : vector<16xf32>
    %115 = vector.multi_reduction <add>, %114, %cst_15 [1] : vector<16x32xf32> to vector<16xf32>
    %116 = vector.shape_cast %115 : vector<16xf32> to vector<16x1xf32>
    %cst_16 = arith.constant 3.200000e+01 : f32
    %117 = vector.broadcast %cst_16 : f32 to vector<16x1xf32>
    %118 = arith.divf %116, %117 : vector<16x1xf32>
    %119 = vector.broadcast %111 : vector<16x1xf32> to vector<16x32xf32>
    %120 = arith.subf %107, %119 : vector<16x32xf32>
    %cst_17 = arith.constant 9.99999974E-6 : f32
    %121 = vector.broadcast %cst_17 : f32 to vector<16x1xf32>
    %122 = arith.addf %118, %121 : vector<16x1xf32>
    %123 = math.rsqrt %122 : vector<16x1xf32>
    %124 = vector.broadcast %123 : vector<16x1xf32> to vector<16x32xf32>
    %125 = arith.mulf %120, %124 : vector<16x32xf32>
    %126 = vector.broadcast %12 : vector<1x32xf32> to vector<16x32xf32>
    %127 = arith.mulf %125, %126 : vector<16x32xf32>
    %128 = vector.broadcast %13 : vector<1x32xf32> to vector<16x32xf32>
    %129 = arith.addf %127, %128 : vector<16x32xf32>
    %cst_18 = arith.constant dense<0.000000e+00> : vector<16x64xf32>
    %130 = tpu.matmul %129, %5, %cst_18 {dimension_numbers = #tpu.dot_dimension_numbers<[1], [0], [0], [1], [0, 0, 1, 1], [], []>} : vector<16x32xf32>, vector<32x64xf32>, vector<16x64xf32> -> vector<16x64xf32>
    %131 = vector.broadcast %10 : vector<1x64xf32> to vector<16x64xf32>
    %132 = arith.addf %130, %131 : vector<16x64xf32>
    %cst_19 = arith.constant 0.000000e+00 : f32
    %133 = vector.broadcast %cst_19 : f32 to vector<16x64xf32>
    %134 = arith.maximumf %132, %133 : vector<16x64xf32>
    %cst_20 = arith.constant dense<0.000000e+00> : vector<16x32xf32>
    %135 = tpu.matmul %134, %6, %cst_20 {dimension_numbers = #tpu.dot_dimension_numbers<[1], [0], [0], [1], [0, 0, 1, 1], [], []>} : vector<16x64xf32>, vector<64x32xf32>, vector<16x32xf32> -> vector<16x32xf32>
    %136 = vector.broadcast %11 : vector<1x32xf32> to vector<16x32xf32>
    %137 = arith.addf %135, %136 : vector<16x32xf32>
    %138 = arith.addf %129, %137 : vector<16x32xf32>
    %cst_21 = arith.constant dense<0.000000e+00> : vector<16xf32>
    %139 = vector.multi_reduction <add>, %138, %cst_21 [1] : vector<16x32xf32> to vector<16xf32>
    %140 = vector.shape_cast %139 : vector<16xf32> to vector<16x1xf32>
    %cst_22 = arith.constant 3.200000e+01 : f32
    %141 = vector.broadcast %cst_22 : f32 to vector<16x1xf32>
    %142 = arith.divf %140, %141 : vector<16x1xf32>
    %143 = vector.broadcast %142 : vector<16x1xf32> to vector<16x32xf32>
    %144 = arith.subf %138, %143 : vector<16x32xf32>
    %145 = arith.mulf %144, %144 : vector<16x32xf32>
    %cst_23 = arith.constant dense<0.000000e+00> : vector<16xf32>
    %146 = vector.multi_reduction <add>, %145, %cst_23 [1] : vector<16x32xf32> to vector<16xf32>
    %147 = vector.shape_cast %146 : vector<16xf32> to vector<16x1xf32>
    %cst_24 = arith.constant 3.200000e+01 : f32
    %148 = vector.broadcast %cst_24 : f32 to vector<16x1xf32>
    %149 = arith.divf %147, %148 : vector<16x1xf32>
    %150 = vector.broadcast %142 : vector<16x1xf32> to vector<16x32xf32>
    %151 = arith.subf %138, %150 : vector<16x32xf32>
    %cst_25 = arith.constant 9.99999974E-6 : f32
    %152 = vector.broadcast %cst_25 : f32 to vector<16x1xf32>
    %153 = arith.addf %149, %152 : vector<16x1xf32>
    %154 = math.rsqrt %153 : vector<16x1xf32>
    %155 = vector.broadcast %154 : vector<16x1xf32> to vector<16x32xf32>
    %156 = arith.mulf %151, %155 : vector<16x32xf32>
    %157 = vector.broadcast %14 : vector<1x32xf32> to vector<16x32xf32>
    %158 = arith.mulf %156, %157 : vector<16x32xf32>
    %159 = vector.broadcast %15 : vector<1x32xf32> to vector<16x32xf32>
    %160 = arith.addf %158, %159 : vector<16x32xf32>
    %c184 = arith.constant 184 : index
    %c0_26 = arith.constant 0 : index
    %161 = vector.load %arg1[%c184, %c0_26] : memref<408x128xf32, #tpu.memory_space<vmem>>, vector<32x96xf32>
    %c216 = arith.constant 216 : index
    %c0_27 = arith.constant 0 : index
    %162 = vector.load %arg1[%c216, %c0_27] : memref<408x128xf32, #tpu.memory_space<vmem>>, vector<32x32xf32>
    %c248 = arith.constant 248 : index
    %c0_28 = arith.constant 0 : index
    %163 = vector.load %arg1[%c248, %c0_28] : memref<408x128xf32, #tpu.memory_space<vmem>>, vector<32x64xf32>
    %c280 = arith.constant 280 : index
    %c0_29 = arith.constant 0 : index
    %164 = vector.load %arg1[%c280, %c0_29] : memref<408x128xf32, #tpu.memory_space<vmem>>, vector<64x32xf32>
    %c344 = arith.constant 344 : index
    %c0_30 = arith.constant 0 : index
    %165 = vector.load %arg1[%c344, %c0_30] : memref<408x128xf32, #tpu.memory_space<vmem>>, vector<8x128xf32>
    %166 = vector.extract_strided_slice %165 {offsets = [0, 0], sizes = [1, 96], strides = [1, 1]} : vector<8x128xf32> to vector<1x96xf32>
    %167 = vector.extract_strided_slice %165 {offsets = [1, 0], sizes = [1, 32], strides = [1, 1]} : vector<8x128xf32> to vector<1x32xf32>
    %168 = vector.extract_strided_slice %165 {offsets = [2, 0], sizes = [1, 64], strides = [1, 1]} : vector<8x128xf32> to vector<1x64xf32>
    %169 = vector.extract_strided_slice %165 {offsets = [3, 0], sizes = [1, 32], strides = [1, 1]} : vector<8x128xf32> to vector<1x32xf32>
    %170 = vector.extract_strided_slice %165 {offsets = [4, 0], sizes = [1, 32], strides = [1, 1]} : vector<8x128xf32> to vector<1x32xf32>
    %171 = vector.extract_strided_slice %165 {offsets = [5, 0], sizes = [1, 32], strides = [1, 1]} : vector<8x128xf32> to vector<1x32xf32>
    %172 = vector.extract_strided_slice %165 {offsets = [6, 0], sizes = [1, 32], strides = [1, 1]} : vector<8x128xf32> to vector<1x32xf32>
    %173 = vector.extract_strided_slice %165 {offsets = [7, 0], sizes = [1, 32], strides = [1, 1]} : vector<8x128xf32> to vector<1x32xf32>
    %cst_31 = arith.constant dense<0.000000e+00> : vector<16x96xf32>
    %174 = tpu.matmul %160, %161, %cst_31 {dimension_numbers = #tpu.dot_dimension_numbers<[1], [0], [0], [1], [0, 0, 1, 1], [], []>} : vector<16x32xf32>, vector<32x96xf32>, vector<16x96xf32> -> vector<16x96xf32>
    %175 = vector.broadcast %166 : vector<1x96xf32> to vector<16x96xf32>
    %176 = arith.addf %174, %175 : vector<16x96xf32>
    %177 = vector.extract_strided_slice %176 {offsets = [0, 0], sizes = [16, 32], strides = [1, 1]} : vector<16x96xf32> to vector<16x32xf32>
    %178 = vector.extract_strided_slice %176 {offsets = [0, 32], sizes = [16, 32], strides = [1, 1]} : vector<16x96xf32> to vector<16x32xf32>
    %179 = vector.extract_strided_slice %176 {offsets = [0, 64], sizes = [16, 32], strides = [1, 1]} : vector<16x96xf32> to vector<16x32xf32>
    %180 = vector.extract_strided_slice %177 {offsets = [0, 0], sizes = [8, 8], strides = [1, 1]} : vector<16x32xf32> to vector<8x8xf32>
    %181 = vector.extract_strided_slice %177 {offsets = [0, 8], sizes = [8, 8], strides = [1, 1]} : vector<16x32xf32> to vector<8x8xf32>
    %182 = vector.extract_strided_slice %177 {offsets = [0, 16], sizes = [8, 8], strides = [1, 1]} : vector<16x32xf32> to vector<8x8xf32>
    %183 = vector.extract_strided_slice %177 {offsets = [0, 24], sizes = [8, 8], strides = [1, 1]} : vector<16x32xf32> to vector<8x8xf32>
    %184 = vector.extract_strided_slice %177 {offsets = [8, 0], sizes = [8, 8], strides = [1, 1]} : vector<16x32xf32> to vector<8x8xf32>
    %185 = vector.extract_strided_slice %177 {offsets = [8, 8], sizes = [8, 8], strides = [1, 1]} : vector<16x32xf32> to vector<8x8xf32>
    %186 = vector.extract_strided_slice %177 {offsets = [8, 16], sizes = [8, 8], strides = [1, 1]} : vector<16x32xf32> to vector<8x8xf32>
    %187 = vector.extract_strided_slice %177 {offsets = [8, 24], sizes = [8, 8], strides = [1, 1]} : vector<16x32xf32> to vector<8x8xf32>
    %188 = vector.shape_cast %180 : vector<8x8xf32> to vector<1x8x8xf32>
    %189 = vector.shape_cast %181 : vector<8x8xf32> to vector<1x8x8xf32>
    %190 = vector.shape_cast %182 : vector<8x8xf32> to vector<1x8x8xf32>
    %191 = vector.shape_cast %183 : vector<8x8xf32> to vector<1x8x8xf32>
    %192 = vector.shape_cast %184 : vector<8x8xf32> to vector<1x8x8xf32>
    %193 = vector.shape_cast %185 : vector<8x8xf32> to vector<1x8x8xf32>
    %194 = vector.shape_cast %186 : vector<8x8xf32> to vector<1x8x8xf32>
    %195 = vector.shape_cast %187 : vector<8x8xf32> to vector<1x8x8xf32>
    %196 = tpu.concatenate %188, %189, %190, %191, %192, %193, %194, %195 in 0 : vector<1x8x8xf32>, vector<1x8x8xf32>, vector<1x8x8xf32>, vector<1x8x8xf32>, vector<1x8x8xf32>, vector<1x8x8xf32>, vector<1x8x8xf32>, vector<1x8x8xf32> -> vector<8x8x8xf32>
    %197 = vector.extract_strided_slice %178 {offsets = [0, 0], sizes = [8, 8], strides = [1, 1]} : vector<16x32xf32> to vector<8x8xf32>
    %198 = vector.extract_strided_slice %178 {offsets = [0, 8], sizes = [8, 8], strides = [1, 1]} : vector<16x32xf32> to vector<8x8xf32>
    %199 = vector.extract_strided_slice %178 {offsets = [0, 16], sizes = [8, 8], strides = [1, 1]} : vector<16x32xf32> to vector<8x8xf32>
    %200 = vector.extract_strided_slice %178 {offsets = [0, 24], sizes = [8, 8], strides = [1, 1]} : vector<16x32xf32> to vector<8x8xf32>
    %201 = vector.extract_strided_slice %178 {offsets = [8, 0], sizes = [8, 8], strides = [1, 1]} : vector<16x32xf32> to vector<8x8xf32>
    %202 = vector.extract_strided_slice %178 {offsets = [8, 8], sizes = [8, 8], strides = [1, 1]} : vector<16x32xf32> to vector<8x8xf32>
    %203 = vector.extract_strided_slice %178 {offsets = [8, 16], sizes = [8, 8], strides = [1, 1]} : vector<16x32xf32> to vector<8x8xf32>
    %204 = vector.extract_strided_slice %178 {offsets = [8, 24], sizes = [8, 8], strides = [1, 1]} : vector<16x32xf32> to vector<8x8xf32>
    %205 = vector.shape_cast %197 : vector<8x8xf32> to vector<1x8x8xf32>
    %206 = vector.shape_cast %198 : vector<8x8xf32> to vector<1x8x8xf32>
    %207 = vector.shape_cast %199 : vector<8x8xf32> to vector<1x8x8xf32>
    %208 = vector.shape_cast %200 : vector<8x8xf32> to vector<1x8x8xf32>
    %209 = vector.shape_cast %201 : vector<8x8xf32> to vector<1x8x8xf32>
    %210 = vector.shape_cast %202 : vector<8x8xf32> to vector<1x8x8xf32>
    %211 = vector.shape_cast %203 : vector<8x8xf32> to vector<1x8x8xf32>
    %212 = vector.shape_cast %204 : vector<8x8xf32> to vector<1x8x8xf32>
    %213 = tpu.concatenate %205, %206, %207, %208, %209, %210, %211, %212 in 0 : vector<1x8x8xf32>, vector<1x8x8xf32>, vector<1x8x8xf32>, vector<1x8x8xf32>, vector<1x8x8xf32>, vector<1x8x8xf32>, vector<1x8x8xf32>, vector<1x8x8xf32> -> vector<8x8x8xf32>
    %214 = vector.extract_strided_slice %179 {offsets = [0, 0], sizes = [8, 8], strides = [1, 1]} : vector<16x32xf32> to vector<8x8xf32>
    %215 = vector.extract_strided_slice %179 {offsets = [0, 8], sizes = [8, 8], strides = [1, 1]} : vector<16x32xf32> to vector<8x8xf32>
    %216 = vector.extract_strided_slice %179 {offsets = [0, 16], sizes = [8, 8], strides = [1, 1]} : vector<16x32xf32> to vector<8x8xf32>
    %217 = vector.extract_strided_slice %179 {offsets = [0, 24], sizes = [8, 8], strides = [1, 1]} : vector<16x32xf32> to vector<8x8xf32>
    %218 = vector.extract_strided_slice %179 {offsets = [8, 0], sizes = [8, 8], strides = [1, 1]} : vector<16x32xf32> to vector<8x8xf32>
    %219 = vector.extract_strided_slice %179 {offsets = [8, 8], sizes = [8, 8], strides = [1, 1]} : vector<16x32xf32> to vector<8x8xf32>
    %220 = vector.extract_strided_slice %179 {offsets = [8, 16], sizes = [8, 8], strides = [1, 1]} : vector<16x32xf32> to vector<8x8xf32>
    %221 = vector.extract_strided_slice %179 {offsets = [8, 24], sizes = [8, 8], strides = [1, 1]} : vector<16x32xf32> to vector<8x8xf32>
    %222 = vector.shape_cast %214 : vector<8x8xf32> to vector<1x8x8xf32>
    %223 = vector.shape_cast %215 : vector<8x8xf32> to vector<1x8x8xf32>
    %224 = vector.shape_cast %216 : vector<8x8xf32> to vector<1x8x8xf32>
    %225 = vector.shape_cast %217 : vector<8x8xf32> to vector<1x8x8xf32>
    %226 = vector.shape_cast %218 : vector<8x8xf32> to vector<1x8x8xf32>
    %227 = vector.shape_cast %219 : vector<8x8xf32> to vector<1x8x8xf32>
    %228 = vector.shape_cast %220 : vector<8x8xf32> to vector<1x8x8xf32>
    %229 = vector.shape_cast %221 : vector<8x8xf32> to vector<1x8x8xf32>
    %230 = tpu.concatenate %222, %223, %224, %225, %226, %227, %228, %229 in 0 : vector<1x8x8xf32>, vector<1x8x8xf32>, vector<1x8x8xf32>, vector<1x8x8xf32>, vector<1x8x8xf32>, vector<1x8x8xf32>, vector<1x8x8xf32>, vector<1x8x8xf32> -> vector<8x8x8xf32>
    "tpu.trace_start"() <{level = 10 : i32, message = "nsd,ntd->nst"}> : () -> ()
    %cst_32 = arith.constant dense<0.000000e+00> : vector<8x8x8xf32>
    %231 = tpu.matmul %196, %213, %cst_32 {dimension_numbers = #tpu.dot_dimension_numbers<[2], [2], [1], [1], [0, 0, 0, 1, 1, 1], [0], [0]>} : vector<8x8x8xf32>, vector<8x8x8xf32>, vector<8x8x8xf32> -> vector<8x8x8xf32>
    "tpu.trace_stop"() : () -> ()
    %cst_33 = arith.constant dense<0xFF800000> : vector<8x8xf32>
    %232 = vector.multi_reduction <maximumf>, %231, %cst_33 [2] : vector<8x8x8xf32> to vector<8x8xf32>
    %233 = vector.shape_cast %232 : vector<8x8xf32> to vector<8x8x1xf32>
    %234 = vector.broadcast %233 : vector<8x8x1xf32> to vector<8x8x8xf32>
    %235 = arith.subf %231, %234 : vector<8x8x8xf32>
    %236 = math.exp %235 : vector<8x8x8xf32>
    %cst_34 = arith.constant dense<0.000000e+00> : vector<8x8xf32>
    %237 = vector.multi_reduction <add>, %236, %cst_34 [2] : vector<8x8x8xf32> to vector<8x8xf32>
    %238 = vector.shape_cast %237 : vector<8x8xf32> to vector<8x8x1xf32>
    %239 = tpu.reciprocal %238 {approx = true} : vector<8x8x1xf32> -> vector<8x8x1xf32>
    %240 = vector.broadcast %239 : vector<8x8x1xf32> to vector<8x8x8xf32>
    %241 = arith.mulf %236, %240 : vector<8x8x8xf32>
    "tpu.trace_start"() <{level = 10 : i32, message = "nst,ntd->nsd"}> : () -> ()
    %cst_35 = arith.constant dense<0.000000e+00> : vector<8x8x8xf32>
    %242 = tpu.matmul %241, %230, %cst_35 {dimension_numbers = #tpu.dot_dimension_numbers<[2], [1], [1], [2], [0, 0, 0, 1, 1, 2], [0], [0]>} : vector<8x8x8xf32>, vector<8x8x8xf32>, vector<8x8x8xf32> -> vector<8x8x8xf32>
    "tpu.trace_stop"() : () -> ()
    %243 = vector.extract_strided_slice %242 {offsets = [0, 0, 0], sizes = [1, 8, 8], strides = [1, 1, 1]} : vector<8x8x8xf32> to vector<1x8x8xf32>
    %244 = vector.shape_cast %243 : vector<1x8x8xf32> to vector<8x8xf32>
    %245 = vector.extract_strided_slice %242 {offsets = [1, 0, 0], sizes = [1, 8, 8], strides = [1, 1, 1]} : vector<8x8x8xf32> to vector<1x8x8xf32>
    %246 = vector.shape_cast %245 : vector<1x8x8xf32> to vector<8x8xf32>
    %247 = vector.extract_strided_slice %242 {offsets = [2, 0, 0], sizes = [1, 8, 8], strides = [1, 1, 1]} : vector<8x8x8xf32> to vector<1x8x8xf32>
    %248 = vector.shape_cast %247 : vector<1x8x8xf32> to vector<8x8xf32>
    %249 = vector.extract_strided_slice %242 {offsets = [3, 0, 0], sizes = [1, 8, 8], strides = [1, 1, 1]} : vector<8x8x8xf32> to vector<1x8x8xf32>
    %250 = vector.shape_cast %249 : vector<1x8x8xf32> to vector<8x8xf32>
    %251 = tpu.concatenate %244, %246, %248, %250 in 1 : vector<8x8xf32>, vector<8x8xf32>, vector<8x8xf32>, vector<8x8xf32> -> vector<8x32xf32>
    %252 = vector.extract_strided_slice %242 {offsets = [4, 0, 0], sizes = [1, 8, 8], strides = [1, 1, 1]} : vector<8x8x8xf32> to vector<1x8x8xf32>
    %253 = vector.shape_cast %252 : vector<1x8x8xf32> to vector<8x8xf32>
    %254 = vector.extract_strided_slice %242 {offsets = [5, 0, 0], sizes = [1, 8, 8], strides = [1, 1, 1]} : vector<8x8x8xf32> to vector<1x8x8xf32>
    %255 = vector.shape_cast %254 : vector<1x8x8xf32> to vector<8x8xf32>
    %256 = vector.extract_strided_slice %242 {offsets = [6, 0, 0], sizes = [1, 8, 8], strides = [1, 1, 1]} : vector<8x8x8xf32> to vector<1x8x8xf32>
    %257 = vector.shape_cast %256 : vector<1x8x8xf32> to vector<8x8xf32>
    %258 = vector.extract_strided_slice %242 {offsets = [7, 0, 0], sizes = [1, 8, 8], strides = [1, 1, 1]} : vector<8x8x8xf32> to vector<1x8x8xf32>
    %259 = vector.shape_cast %258 : vector<1x8x8xf32> to vector<8x8xf32>
    %260 = tpu.concatenate %253, %255, %257, %259 in 1 : vector<8x8xf32>, vector<8x8xf32>, vector<8x8xf32>, vector<8x8xf32> -> vector<8x32xf32>
    %261 = tpu.concatenate %251, %260 in 0 : vector<8x32xf32>, vector<8x32xf32> -> vector<16x32xf32>
    %cst_36 = arith.constant dense<0.000000e+00> : vector<16x32xf32>
    %262 = tpu.matmul %261, %162, %cst_36 {dimension_numbers = #tpu.dot_dimension_numbers<[1], [0], [0], [1], [0, 0, 1, 1], [], []>} : vector<16x32xf32>, vector<32x32xf32>, vector<16x32xf32> -> vector<16x32xf32>
    %263 = vector.broadcast %167 : vector<1x32xf32> to vector<16x32xf32>
    %264 = arith.addf %262, %263 : vector<16x32xf32>
    %265 = arith.addf %160, %264 : vector<16x32xf32>
    %cst_37 = arith.constant dense<0.000000e+00> : vector<16xf32>
    %266 = vector.multi_reduction <add>, %265, %cst_37 [1] : vector<16x32xf32> to vector<16xf32>
    %267 = vector.shape_cast %266 : vector<16xf32> to vector<16x1xf32>
    %cst_38 = arith.constant 3.200000e+01 : f32
    %268 = vector.broadcast %cst_38 : f32 to vector<16x1xf32>
    %269 = arith.divf %267, %268 : vector<16x1xf32>
    %270 = vector.broadcast %269 : vector<16x1xf32> to vector<16x32xf32>
    %271 = arith.subf %265, %270 : vector<16x32xf32>
    %272 = arith.mulf %271, %271 : vector<16x32xf32>
    %cst_39 = arith.constant dense<0.000000e+00> : vector<16xf32>
    %273 = vector.multi_reduction <add>, %272, %cst_39 [1] : vector<16x32xf32> to vector<16xf32>
    %274 = vector.shape_cast %273 : vector<16xf32> to vector<16x1xf32>
    %cst_40 = arith.constant 3.200000e+01 : f32
    %275 = vector.broadcast %cst_40 : f32 to vector<16x1xf32>
    %276 = arith.divf %274, %275 : vector<16x1xf32>
    %277 = vector.broadcast %269 : vector<16x1xf32> to vector<16x32xf32>
    %278 = arith.subf %265, %277 : vector<16x32xf32>
    %cst_41 = arith.constant 9.99999974E-6 : f32
    %279 = vector.broadcast %cst_41 : f32 to vector<16x1xf32>
    %280 = arith.addf %276, %279 : vector<16x1xf32>
    %281 = math.rsqrt %280 : vector<16x1xf32>
    %282 = vector.broadcast %281 : vector<16x1xf32> to vector<16x32xf32>
    %283 = arith.mulf %278, %282 : vector<16x32xf32>
    %284 = vector.broadcast %170 : vector<1x32xf32> to vector<16x32xf32>
    %285 = arith.mulf %283, %284 : vector<16x32xf32>
    %286 = vector.broadcast %171 : vector<1x32xf32> to vector<16x32xf32>
    %287 = arith.addf %285, %286 : vector<16x32xf32>
    %cst_42 = arith.constant dense<0.000000e+00> : vector<16x64xf32>
    %288 = tpu.matmul %287, %163, %cst_42 {dimension_numbers = #tpu.dot_dimension_numbers<[1], [0], [0], [1], [0, 0, 1, 1], [], []>} : vector<16x32xf32>, vector<32x64xf32>, vector<16x64xf32> -> vector<16x64xf32>
    %289 = vector.broadcast %168 : vector<1x64xf32> to vector<16x64xf32>
    %290 = arith.addf %288, %289 : vector<16x64xf32>
    %cst_43 = arith.constant 0.000000e+00 : f32
    %291 = vector.broadcast %cst_43 : f32 to vector<16x64xf32>
    %292 = arith.maximumf %290, %291 : vector<16x64xf32>
    %cst_44 = arith.constant dense<0.000000e+00> : vector<16x32xf32>
    %293 = tpu.matmul %292, %164, %cst_44 {dimension_numbers = #tpu.dot_dimension_numbers<[1], [0], [0], [1], [0, 0, 1, 1], [], []>} : vector<16x64xf32>, vector<64x32xf32>, vector<16x32xf32> -> vector<16x32xf32>
    %294 = vector.broadcast %169 : vector<1x32xf32> to vector<16x32xf32>
    %295 = arith.addf %293, %294 : vector<16x32xf32>
    %296 = arith.addf %287, %295 : vector<16x32xf32>
    %cst_45 = arith.constant dense<0.000000e+00> : vector<16xf32>
    %297 = vector.multi_reduction <add>, %296, %cst_45 [1] : vector<16x32xf32> to vector<16xf32>
    %298 = vector.shape_cast %297 : vector<16xf32> to vector<16x1xf32>
    %cst_46 = arith.constant 3.200000e+01 : f32
    %299 = vector.broadcast %cst_46 : f32 to vector<16x1xf32>
    %300 = arith.divf %298, %299 : vector<16x1xf32>
    %301 = vector.broadcast %300 : vector<16x1xf32> to vector<16x32xf32>
    %302 = arith.subf %296, %301 : vector<16x32xf32>
    %303 = arith.mulf %302, %302 : vector<16x32xf32>
    %cst_47 = arith.constant dense<0.000000e+00> : vector<16xf32>
    %304 = vector.multi_reduction <add>, %303, %cst_47 [1] : vector<16x32xf32> to vector<16xf32>
    %305 = vector.shape_cast %304 : vector<16xf32> to vector<16x1xf32>
    %cst_48 = arith.constant 3.200000e+01 : f32
    %306 = vector.broadcast %cst_48 : f32 to vector<16x1xf32>
    %307 = arith.divf %305, %306 : vector<16x1xf32>
    %308 = vector.broadcast %300 : vector<16x1xf32> to vector<16x32xf32>
    %309 = arith.subf %296, %308 : vector<16x32xf32>
    %cst_49 = arith.constant 9.99999974E-6 : f32
    %310 = vector.broadcast %cst_49 : f32 to vector<16x1xf32>
    %311 = arith.addf %307, %310 : vector<16x1xf32>
    %312 = math.rsqrt %311 : vector<16x1xf32>
    %313 = vector.broadcast %312 : vector<16x1xf32> to vector<16x32xf32>
    %314 = arith.mulf %309, %313 : vector<16x32xf32>
    %315 = vector.broadcast %172 : vector<1x32xf32> to vector<16x32xf32>
    %316 = arith.mulf %314, %315 : vector<16x32xf32>
    %317 = vector.broadcast %173 : vector<1x32xf32> to vector<16x32xf32>
    %318 = arith.addf %316, %317 : vector<16x32xf32>
    %c352 = arith.constant 352 : index
    %c0_50 = arith.constant 0 : index
    %319 = vector.load %arg1[%c352, %c0_50] : memref<408x128xf32, #tpu.memory_space<vmem>>, vector<32x16xf32>
    %c384 = arith.constant 384 : index
    %c0_51 = arith.constant 0 : index
    %320 = vector.load %arg1[%c384, %c0_51] : memref<408x128xf32, #tpu.memory_space<vmem>>, vector<16x128xf32>
    %c400 = arith.constant 400 : index
    %c0_52 = arith.constant 0 : index
    %321 = vector.load %arg1[%c400, %c0_52] : memref<408x128xf32, #tpu.memory_space<vmem>>, vector<2x128xf32>
    %322 = vector.extract_strided_slice %321 {offsets = [0, 0], sizes = [1, 16], strides = [1, 1]} : vector<2x128xf32> to vector<1x16xf32>
    %323 = vector.extract_strided_slice %321 {offsets = [1, 0], sizes = [1, 128], strides = [1, 1]} : vector<2x128xf32> to vector<1x128xf32>
    %324 = vector.extract_strided_slice %318 {offsets = [0, 0], sizes = [8, 32], strides = [1, 1]} : vector<16x32xf32> to vector<8x32xf32>
    %cst_53 = arith.constant dense<0.000000e+00> : vector<32xf32>
    %325 = vector.multi_reduction <add>, %324, %cst_53 [0] : vector<8x32xf32> to vector<32xf32>
    %326 = vector.shape_cast %325 : vector<32xf32> to vector<1x32xf32>
    %327 = vector.extract_strided_slice %318 {offsets = [8, 0], sizes = [8, 32], strides = [1, 1]} : vector<16x32xf32> to vector<8x32xf32>
    %cst_54 = arith.constant dense<0.000000e+00> : vector<32xf32>
    %328 = vector.multi_reduction <add>, %327, %cst_54 [0] : vector<8x32xf32> to vector<32xf32>
    %329 = vector.shape_cast %328 : vector<32xf32> to vector<1x32xf32>
    %330 = tpu.concatenate %326, %329 in 0 : vector<1x32xf32>, vector<1x32xf32> -> vector<2x32xf32>
    %cst_55 = arith.constant 1.250000e-01 : f32
    %331 = vector.broadcast %cst_55 : f32 to vector<2x32xf32>
    %332 = arith.mulf %330, %331 : vector<2x32xf32>
    %cst_56 = arith.constant dense<0.000000e+00> : vector<2x16xf32>
    %333 = tpu.matmul %332, %319, %cst_56 {dimension_numbers = #tpu.dot_dimension_numbers<[1], [0], [0], [1], [0, 0, 1, 1], [], []>} : vector<2x32xf32>, vector<32x16xf32>, vector<2x16xf32> -> vector<2x16xf32>
    %334 = vector.broadcast %322 : vector<1x16xf32> to vector<2x16xf32>
    %335 = arith.addf %333, %334 : vector<2x16xf32>
    %cst_57 = arith.constant 0.000000e+00 : f32
    %336 = vector.broadcast %cst_57 : f32 to vector<2x16xf32>
    %337 = arith.maximumf %335, %336 : vector<2x16xf32>
    %cst_58 = arith.constant dense<0.000000e+00> : vector<2x128xf32>
    %338 = tpu.matmul %337, %320, %cst_58 {dimension_numbers = #tpu.dot_dimension_numbers<[1], [0], [0], [1], [0, 0, 1, 1], [], []>} : vector<2x16xf32>, vector<16x128xf32>, vector<2x128xf32> -> vector<2x128xf32>
    %339 = vector.broadcast %323 : vector<1x128xf32> to vector<2x128xf32>
    %340 = arith.addf %338, %339 : vector<2x128xf32>
    %c0_59 = arith.constant 0 : index
    %c0_60 = arith.constant 0 : index
    %341 = vector.load %arg2[%c0_59, %c0_60] : memref<2x128xf32, #tpu.memory_space<vmem>>, vector<2x128xf32>
    tpu.vector_store %arg2[%c0_59, %c0_60], %340 {strides = array<i32>} : memref<2x128xf32, #tpu.memory_space<vmem>>, vector<2x128xf32>,
    return
  }
}

</mosaic_0001>

<bundles_post_ra>
// kernel: transformer_forward.1
= control target key start
LH: loop header
LB: loop body
LE: loop exit
PB: predicated region body
PF: predicated region fallthrough
CT: control target
= control target key end

     0   :  { %7 = vsyncpa [#allocation3], 0  ;;  %s4992_s0 = inlined_call_operand.hbm [shape: f32[16,32], index: 0, kind: input, shape index: {}]   ;;  %s4993_s1 = inlined_call_operand.hbm [shape: f32[408,128], index: 1, kind: input, shape index: {}]   ;;  %s4994_s2 = inlined_call_operand.hbm [shape: f32[2,128], index: 2, kind: output, shape index: {}]  }
   0x1   :  { %8 = vsyncpa [#allocation6], 0 }
   0x2   :  { %9 = vsyncpa [#allocation4], 0  ;;  %s4466_s9 = smov [#allocation2]  }
   0x3   :  { %s15_s10 = sshll.u32 %s4466_s9, 4  ;;  %s16_s10 = int_to_ptr.vmem [resolvable:$true] %s15_s10 }
   0x4   :  { %s4408_s11 = scalar_lea.vmem %s16_s10, 256  ;;  %p4413_p1 = scmp.lt.s32.totalorder %s16_s10, %s16_s10 }
   0x5   :  { %p4409_p0 = scmp.ne.s32.totalorder %s16_s10, %s4408_s11  ;;  %p4414_p2 = scmp.lt.s32.totalorder %s4408_s11, %s4408_s11 }
   0x7   :  { %p4415_p3 = por %p4414_p2, %p4413_p1 }
   0x9   :  { %p4416_p4 = pnand %p4415_p3, %p4409_p0 }
   0xb   :  { %4419 = shalt.err (!%p4416_p4)
}
   0xc   :  { %s4467_s12 = smov 128   ;;  %s4468_s13 = smov 8  }
   0xd   :  { %21 = dma.hbm_to_vmem [thread:$0]  %s4992_s0, 256, %s16_s10, [#allocation3], %s4467_s12, %s4467_s12, %s4468_s13  }
   0xe   :  { %s4469_s16 = smov [#allocation5]  }
   0xf   :  { %s27_s17 = sshll.u32 %s4469_s16, 4  ;;  %s28_s17 = int_to_ptr.vmem [resolvable:$true] %s27_s17 }
  0x10   :  { %s4428_s18 = scalar_lea.vmem %s28_s17, 6528  ;;  %p4433_p6 = scmp.lt.s32.totalorder %s28_s17, %s28_s17 }
  0x11   :  { %p4429_p5 = scmp.ne.s32.totalorder %s28_s17, %s4428_s18  ;;  %p4434_p7 = scmp.lt.s32.totalorder %s4428_s18, %s4428_s18 }
  0x13   :  { %p4435_p8 = por %p4434_p7, %p4433_p6 }
  0x15   :  { %p4436_p9 = pnand %p4435_p8, %p4429_p5 }
  0x17   :  { %4439 = shalt.err (!%p4436_p9)
}
  0x18   :  { %33 = dma.hbm_to_vmem [thread:$0]  %s4993_s1, 6528, %s28_s17, [#allocation6], %s4467_s12, %s4467_s12, %s4468_s13  }
  0x19   :  { %4460 = dma.done.wait [#allocation3], 256  }
  0x1a   :  { %4461 = vsyncadd [#allocation3], 4294967040 }
  0x1b   :  { %4462 = dma.done.wait [#allocation6], 6528  }
  0x1c   :  { %4463 = vsyncadd [#allocation6], 4294960768  ;;  %v49_v0 = vld [vmem:[#allocation5 + $0x28] sm:$0xff]  ;;  %v48_v1 = vld [vmem:[#allocation5 + $0x20] sm:$0xff]  ;;  %vm71_vm0 = vcmask 261120   ;;  %v67_v10 = vlaneseq  ;;  %v4470_v16 = vmov 0.0  }
  0x1d   :  { %4024 = vmatprep.subr.mxu0 %v49_v0  ;;  %v40_v2 = vld [vmem:[#allocation2] sm:$0xff]  ;;  %v42_v3 = vld [vmem:[#allocation5] sm:$0xff]  ;;  %v47_v4 = vld [vmem:[#allocation5 + $0x18] sm:$0xff]  ;;  %4035 = vmatprep.subr.mxu1 %v4470_v16  ;;  %s4471_s0 = smov 104   ;;  %s4472_s1 = smov 120   ;;  %vm4473_vm1 = vmmov 0  }
  0x1e   :  { %4025 = vmatpush3.msra.mxu0 %v49_v0  ;;  %v4503_v5 = vadd.f32 %v42_v3, %v40_v2  ;;  %v41_v6 = vld [vmem:[#allocation2 + $0x8] sm:$0xff]  ;;  %v43_v7 = vld [vmem:[#allocation5 + $0x8] sm:$0xff]  ;;  %v46_v8 = vld [vmem:[#allocation5 + $0x10] sm:$0xff]  ;;  %v4511_v11 = vshrl.u32 %v67_v10, 7  ;;  %4037 = vmatprep.mubr.msk.f32.mxu1 %vm4473_vm1, %v4470_v16  ;;  %s4474_s21 = smov 112   ;;  %s4475_s22 = smov 96  }
  0x1f   :  { %4026 = vmatprep.subr.mxu0 %v48_v1  ;;  %v4507_v9 = vadd.f32 %v43_v7, %v41_v6  ;;  %v4516_v13 = vld [vmem:[#allocation5 + $0xb0] sm:$0xff]  ;;  %vm169_vm2 = vcmask 64512   ;;  %s4476_s23 = smov 64   ;;  %s4477_s24 = smov 16   ;;  %vm1485_vm3 = vcmask 130048   ;;  %vm1487_vm4 = vcmask 195584  }
  0x20   :  { %4027 = vmatpush3.msra.mxu0 %v48_v1  ;;  %4032 = vmatprep.mubr.msk.f32.mxu0 %vm71_vm0, %v4503_v5  ;;  %v4514_v12 = vsub.s32 0, %v4511_v11  ;;  %s4478_s25 = smov 24   ;;  %vm1721_vm5 = vcmask 523264   ;;  %vm3655_vm6 = vcmask 1040384   ;;  %s4479_s26 = smov [#allocation7]  }
  0x21   :  { %4028 = vmatprep.subr.mxu0 %v47_v4  ;;  %s3820_s27 = sshll.u32 %s4479_s26, 4  ;;  %s3821_s27 = int_to_ptr.vmem [resolvable:$true] %s3820_s27 }
  0x22   :  { %4029 = vmatpush3.msra.mxu0 %v47_v4  ;;  %v70_v15 = vrot.slane %v4516_v13, %v4514_v12  ;;  %s4440_s28 = scalar_lea.vmem %s3821_s27, 32  ;;  %p4445_p11 = scmp.lt.s32.totalorder %s3821_s27, %s3821_s27 }
  0x23   :  { %4030 = vmatprep.subr.mxu0 %v46_v8  ;;  %p4441_p10 = scmp.ne.s32.totalorder %s3821_s27, %s4440_s28  ;;  %p4446_p12 = scmp.lt.s32.totalorder %s4440_s28, %s4440_s28 }
  0x24   :  { %4031 = vmatpush3.msra.mxu0 %v46_v8 }
  0x25   :  { %4033 = vmatmul.mubr.msk.f32.vlgmr.msra.gmra.mxu0 %vm71_vm0, %v4507_v9  ;;  %4045 = vmatprep.subr.mxu0 %v4470_v16  ;;  %p4447_p13 = por %p4446_p12, %p4445_p11 }
  0x26   :  { %4047 = vmatprep.mubr.msk.f32.mxu0 %vm4473_vm1, %v4470_v16 }
  0x27   :  { %p4448_p0 = pnand %p4447_p13, %p4441_p10 }
  0xe5   :  { %v4034_v14 = vpop.f32.mrf.mxu0 }
  0xe6   :  { %v4532_v19 = vadd.f32 %v4034_v14, %v70_v15 }
  0xe7   :  { %v144_v17 = vpop.f32.mrf.mxu0 }
  0xe8   :  { %v4522_v18 = vadd.f32 %v144_v17, %v70_v15 }
  0xea   :  { %158 = vrot.lane.b32.xlu1 %v4522_v18, %s4471_s0  ;;  %154 = vrot.lane.b32.xlu0 %v4522_v18, %s4472_s1 }
  0xee   :  { %161 = vrot.lane.b32.xlu1 %v4532_v19, %s4472_s1  ;;  %156 = vrot.lane.b32.xlu0 %v4522_v18, %s4474_s21 }
  0xf2   :  { %165 = vrot.lane.b32.xlu1 %v4532_v19, %s4471_s0  ;;  %163 = vrot.lane.b32.xlu0 %v4532_v19, %s4474_s21 }
  0xf6   :  { %167 = vrot.lane.b32.xlu0 %v4522_v18, %s4475_s22 }
 0x15c   :  { %v4544_v20 = vpop.permute.xlu1 %158  ;;  %v4546_v21 = vpop.permute.xlu0 %154 }
 0x15d   :  { %244 = vrot.lane.b32.xlu1 %v4546_v21, %s4475_s22 }
 0x160   :  { %v4550_v22 = vpop.permute.xlu0 %156  ;;  %v4556_v23 = vpop.permute.xlu1 %161 }
 0x161   :  { %396 = vrot.lane.b32.xlu1 %v4544_v20, %s4475_s22  ;;  %320 = vrot.lane.b32.xlu0 %v4550_v22, %s4475_s22 }
 0x164   :  { %v4558_v24 = vpop.permute.xlu0 %163  ;;  %v4564_v25 = vpop.permute.xlu1 %165 }
 0x165   :  { %548 = vrot.lane.b32.xlu1 %v4556_v23, %s4475_s22  ;;  %472 = vrot.lane.b32.xlu0 %v4532_v19, %s4475_s22 }
 0x168   :  { %v168_v26 = vpop.permute.xlu0 %167 }
 0x169   :  { %700 = vrot.lane.b32.xlu1 %v4564_v25, %s4475_s22  ;;  %624 = vrot.lane.b32.xlu0 %v4558_v24, %s4475_s22 }
 0x16a   :  { %4036 = vmatpush3.xpose.msk.msra.mxu1 %vm169_vm2, %v168_v26 }
 0x16b   :  { %4040 = vmatprep.subr.mxu1 %v4470_v16 }
 0x16d   :  { %4038 = vmatmul.mubr.msk.f32.vlgmr.msra.gmra.mxu1 %vm169_vm2, %v4522_v18 }
 0x16e   :  { %4042 = vmatprep.mubr.msk.f32.mxu1 %vm4473_vm1, %v4470_v16 }
 0x1cf   :  { %v245_v27 = vpop.permute.xlu1 %244 }
 0x1d0   :  { %4041 = vmatpush3.xpose.msk.msra.mxu1 %vm169_vm2, %v245_v27 }
 0x1d1   :  { %4050 = vmatprep.subr.mxu1 %v4470_v16 }
 0x1d3   :  { %v397_v28 = vpop.permute.xlu1 %396  ;;  %4043 = vmatmul.mubr.msk.f32.vlgmr.msra.gmra.mxu1 %vm169_vm2, %v4546_v21  ;;  %v321_v29 = vpop.permute.xlu0 %320 }
 0x1d4   :  { %4046 = vmatpush3.xpose.msk.msra.mxu0 %vm169_vm2, %v321_v29  ;;  %4051 = vmatpush3.xpose.msk.msra.mxu1 %vm169_vm2, %v397_v28 }
 0x1d5   :  { %4052 = vmatprep.mubr.msk.f32.mxu1 %vm4473_vm1, %v4470_v16  ;;  %4055 = vmatprep.subr.mxu0 %v4470_v16 }
 0x1d6   :  { %4060 = vmatprep.subr.mxu1 %v4470_v16 }
 0x1d7   :  { %v549_v30 = vpop.permute.xlu1 %548  ;;  %4048 = vmatmul.mubr.msk.f32.vlgmr.msra.gmra.mxu0 %vm169_vm2, %v4550_v22  ;;  %4053 = vmatmul.mubr.msk.f32.vlgmr.msra.gmra.mxu1 %vm169_vm2, %v4544_v20  ;;  %v473_v31 = vpop.permute.xlu0 %472 }
 0x1d8   :  { %4056 = vmatpush3.xpose.msk.msra.mxu0 %vm169_vm2, %v473_v31  ;;  %4061 = vmatpush3.xpose.msk.msra.mxu1 %vm169_vm2, %v549_v30 }
 0x1d9   :  { %4057 = vmatprep.mubr.msk.f32.mxu0 %vm4473_vm1, %v4470_v16  ;;  %4062 = vmatprep.mubr.msk.f32.mxu1 %vm4473_vm1, %v4470_v16 }
 0x1da   :  { %4065 = vmatprep.subr.mxu0 %v4470_v16  ;;  %4070 = vmatprep.subr.mxu1 %v4470_v16 }
 0x1db   :  { %v701_v32 = vpop.permute.xlu1 %700  ;;  %4058 = vmatmul.mubr.msk.f32.vlgmr.msra.gmra.mxu0 %vm169_vm2, %v4532_v19  ;;  %4063 = vmatmul.mubr.msk.f32.vlgmr.msra.gmra.mxu1 %vm169_vm2, %v4556_v23  ;;  %v625_v33 = vpop.permute.xlu0 %624 }
 0x1dc   :  { %4066 = vmatpush3.xpose.msk.msra.mxu0 %vm169_vm2, %v625_v33  ;;  %4071 = vmatpush3.xpose.msk.msra.mxu1 %vm169_vm2, %v701_v32 }
 0x1dd   :  { %4067 = vmatprep.mubr.msk.f32.mxu0 %vm4473_vm1, %v4470_v16  ;;  %4072 = vmatprep.mubr.msk.f32.mxu1 %vm4473_vm1, %v4470_v16 }
 0x1de   :  { %4075 = vmatprep.subr.mxu0 %v4470_v16  ;;  %4080 = vmatprep.subr.mxu1 %v4470_v16 }
 0x1df   :  { %4068 = vmatmul.mubr.msk.f32.vlgmr.msra.gmra.mxu0 %vm169_vm2, %v4558_v24  ;;  %4073 = vmatmul.mubr.msk.f32.vlgmr.msra.gmra.mxu1 %vm169_vm2, %v4564_v25 }
 0x1e0   :  { %4077 = vmatprep.mubr.msk.f32.mxu0 %vm4473_vm1, %v4470_v16  ;;  %4082 = vmatprep.mubr.msk.f32.mxu1 %vm4473_vm1, %v4470_v16 }
 0x22d   :  { %v240_v34 = vpop.f32.mrf.mxu1 }
 0x22e   :  { %v776_v35 = vsel %vm169_vm2, %v240_v34, -inf }
 0x22f   :  { %777 = vmax.xlane.f32.xlu0 %v776_v35  ;;  %v4039_v36 = vpop.f32.mrf.mxu1 }
 0x293   :  { %v316_v37 = vpop.f32.mrf.mxu1 }
 0x294   :  { %v779_v38 = vsel %vm169_vm2, %v316_v37, -inf }
 0x295   :  { %780 = vmax.xlane.f32.xlu1 %v779_v38  ;;  %v4044_v39 = vpop.f32.mrf.mxu1 }
 0x297   :  { %v392_v40 = vpop.f32.mrf.mxu0  ;;  %v468_v41 = vpop.f32.mrf.mxu1 }
 0x298   :  { %v782_v42 = vsel %vm169_vm2, %v392_v40, -inf  ;;  %v785_v47 = vsel %vm169_vm2, %v468_v41, -inf }
 0x299   :  { %v4054_v43 = vpop.f32.mrf.mxu1  ;;  %783 = vmax.xlane.f32.xlu0 %v782_v42  ;;  %v4049_v44 = vpop.f32.mrf.mxu0 }
 0x29b   :  { %v544_v45 = vpop.f32.mrf.mxu0  ;;  %v620_v46 = vpop.f32.mrf.mxu1 }
 0x29c   :  { %v788_v48 = vsel %vm169_vm2, %v544_v45, -inf  ;;  %v791_v53 = vsel %vm169_vm2, %v620_v46, -inf }
 0x29d   :  { %v4064_v49 = vpop.f32.mrf.mxu1  ;;  %786 = vmax.xlane.f32.xlu0 %v785_v47  ;;  %789 = vmax.xlane.f32.xlu1 %v788_v48  ;;  %v4059_v50 = vpop.f32.mrf.mxu0 }
 0x29f   :  { %v696_v51 = vpop.f32.mrf.mxu0  ;;  %v772_v52 = vpop.f32.mrf.mxu1 }
 0x2a0   :  { %v794_v54 = vsel %vm169_vm2, %v696_v51, -inf  ;;  %v797_v57 = vsel %vm169_vm2, %v772_v52, -inf }
 0x2a1   :  { %v4074_v55 = vpop.f32.mrf.mxu1  ;;  %792 = vmax.xlane.f32.xlu0 %v791_v53  ;;  %795 = vmax.xlane.f32.xlu1 %v794_v54  ;;  %v4069_v56 = vpop.f32.mrf.mxu0 }
 0x2a5   :  { %798 = vmax.xlane.f32.xlu0 %v797_v57 }
 0x2b2   :  { %864 = vrot.lane.b32.xlu1 %v4522_v18, %s4476_s23 }
 0x2b6   :  { %1016 = vrot.lane.b32.xlu1 %v4550_v22, %s4476_s23 }
 0x2b8   :  { %v778_v58 = vpop.xlane.xlu0 %777 }
 0x2b9   :  { %v800_v59 = vsub.f32 %v240_v34, %v778_v58 }
 0x2ba   :  { %1092 = vrot.lane.b32.xlu1 %v4544_v20, %s4476_s23 }
 0x2bb   :  { %940 = vrot.lane.b32.xlu0 %v4546_v21, %s4476_s23  ;;  %v808_v60 = vmul.f32 1.442695, %v800_v59 }
 0x2bd   :  { %4320 = vpow2.f32 %v808_v60 }
 0x2be   :  { %1244 = vrot.lane.b32.xlu1 %v4556_v23, %s4476_s23 }
 0x2bf   :  { %1168 = vrot.lane.b32.xlu0 %v4532_v19, %s4476_s23 }
 0x2ca   :  { %v4638_v61 = vpop.eup %4320 }
 0x2cb   :  { %v824_v62 = vsel %vm169_vm2, %v4638_v61, 0.0 }
 0x2e2   :  { %825 = vadd.xlane.f32.xlu1 %v824_v62 }
 0x31e   :  { %v781_v63 = vpop.xlane.xlu1 %780 }
 0x31f   :  { %v801_v0 = vsub.f32 %v316_v37, %v781_v63 }
 0x321   :  { %v810_v1 = vmul.f32 1.442695, %v801_v0 }
 0x322   :  { %v784_v2 = vpop.xlane.xlu0 %783 }
 0x323   :  { %4322 = vpow2.f32 %v810_v1  ;;  %v802_v3 = vsub.f32 %v392_v40, %v784_v2 }
 0x325   :  { %v812_v4 = vmul.f32 1.442695, %v802_v3 }
 0x326   :  { %v790_v6 = vpop.xlane.xlu1 %789  ;;  %v787_v7 = vpop.xlane.xlu0 %786 }
 0x327   :  { %4324 = vpow2.f32 %v812_v4  ;;  %v804_v8 = vsub.f32 %v544_v45, %v790_v6  ;;  %v803_v10 = vsub.f32 %v468_v41, %v787_v7 }
 0x329   :  { %v816_v14 = vmul.f32 1.442695, %v804_v8  ;;  %v814_v15 = vmul.f32 1.442695, %v803_v10 }
 0x32a   :  { %v796_v17 = vpop.xlane.xlu1 %795  ;;  %v793_v18 = vpop.xlane.xlu0 %792 }
 0x32b   :  { %4326 = vpow2.f32 %v816_v14  ;;  %v806_v19 = vsub.f32 %v696_v51, %v796_v17  ;;  %v805_v20 = vsub.f32 %v620_v46, %v793_v18  ;;  %v52_v18 = vld [vmem:[#allocation5 + $0x40] sm:$0xff] }
 0x32c   :  { %4328 = vpow2.f32 %v814_v15  ;;  %v53_v15 = vld [vmem:[#allocation5 + $0x48] sm:$0xff] }
 0x32d   :  { %v820_v21 = vmul.f32 1.442695, %v806_v19  ;;  %v818_v22 = vmul.f32 1.442695, %v805_v20  ;;  %v51_v19 = vld [vmem:[#allocation5 + $0x38] sm:$0xff] }
 0x32e   :  { %v865_v23 = vpop.permute.xlu1 %864  ;;  %v799_v26 = vpop.xlane.xlu0 %798 }
 0x32f   :  { %4330 = vpow2.f32 %v820_v21  ;;  %v807_v27 = vsub.f32 %v772_v52, %v799_v26  ;;  %4076 = vmatpush3.msra.mxu0 %v865_v23 }
 0x330   :  { %v4323_v28 = vpop.eup %4322  ;;  %4332 = vpow2.f32 %v818_v22  ;;  %4085 = vmatprep.subr.mxu0 %v4470_v16  ;;  %v50_v22 = vld [vmem:[#allocation5 + $0x30] sm:$0xff] }
 0x331   :  { %v822_v29 = vmul.f32 1.442695, %v807_v27  ;;  %v827_v30 = vsel %vm169_vm2, %v4323_v28, 0.0 }
 0x332   :  { %828 = vadd.xlane.f32.xlu0 %v827_v30  ;;  %v941_v31 = vpop.permute.xlu0 %940  ;;  %v1017_v44 = vpop.permute.xlu1 %1016 }
 0x333   :  { %4334 = vpow2.f32 %v822_v29  ;;  %4081 = vmatpush3.msra.mxu1 %v941_v31 }
 0x334   :  { %v4325_v32 = vpop.eup %4324  ;;  %4090 = vmatprep.subr.mxu1 %v4470_v16 }
 0x335   :  { %v830_v33 = vsel %vm169_vm2, %v4325_v32, 0.0 }
 0x336   :  { %831 = vadd.xlane.f32.xlu1 %v830_v33  ;;  %v1093_v45 = vpop.permute.xlu1 %1092 }
 0x338   :  { %v4327_v34 = vpop.eup %4326 }
 0x339   :  { %v4329_v35 = vpop.eup %4328  ;;  %v836_v36 = vsel %vm169_vm2, %v4327_v34, 0.0 }
 0x33a   :  { %837 = vadd.xlane.f32.xlu1 %v836_v36  ;;  %v833_v37 = vsel %vm169_vm2, %v4329_v35, 0.0  ;;  %v1245_v46 = vpop.permute.xlu1 %1244 }
 0x33b   :  { %834 = vadd.xlane.f32.xlu0 %v833_v37 }
 0x33c   :  { %v4331_v38 = vpop.eup %4330 }
 0x33d   :  { %v4648_v39 = vpop.eup %4332  ;;  %v842_v40 = vsel %vm169_vm2, %v4331_v38, 0.0 }
 0x33e   :  { %843 = vadd.xlane.f32.xlu1 %v842_v40  ;;  %v839_v41 = vsel %vm169_vm2, %v4648_v39, 0.0 }
 0x33f   :  { %840 = vadd.xlane.f32.xlu0 %v839_v41 }
 0x340   :  { %v4653_v42 = vpop.eup %4334 }
 0x341   :  { %v845_v43 = vsel %vm169_vm2, %v4653_v42, 0.0 }
 0x343   :  { %846 = vadd.xlane.f32.xlu0 %v845_v43 }
 0x34f   :  { %1396 = vrot.lane.b32.xlu1 %v4564_v25, %s4476_s23  ;;  %v1169_v25 = vpop.permute.xlu0 %1168 }
 0x359   :  { %1320 = vrot.lane.b32.xlu0 %v4558_v24, %s4476_s23 }
 0x36b   :  { %v826_v47 = vpop.xlane.xlu1 %825 }
 0x36c   :  { %4336 = vrcp.f32 %v826_v47 }
 0x379   :  { %v4337_v48 = vpop.eup %4336 }
 0x37a   :  { %v856_v49 = vmul.f32 %v4337_v48, %v4638_v61  ;;  %v4703_v48 = vsub.s32 1, %v4511_v11 }
 0x37c   :  { %4078 = vmatmul.mubr.msk.f32.vlgmr.msra.gmra.mxu0 %vm169_vm2, %v856_v49  ;;  %v1507_v49 = vrot.slane %v4516_v13, %v4703_v48 }
 0x37d   :  { %4086 = vmatpush3.msra.mxu0 %v1017_v44  ;;  %4087 = vmatprep.mubr.msk.f32.mxu0 %vm4473_vm1, %v4470_v16 }
 0x37e   :  { %4095 = vmatprep.subr.mxu0 %v4470_v16 }
 0x3bb   :  { %v829_v50 = vpop.xlane.xlu0 %828 }
 0x3bc   :  { %4338 = vrcp.f32 %v829_v50 }
 0x3bf   :  { %v832_v24 = vpop.xlane.xlu1 %831 }
 0x3c0   :  { %4340 = vrcp.f32 %v832_v24 }
 0x3c3   :  { %v838_v51 = vpop.xlane.xlu1 %837 }
 0x3c4   :  { %4342 = vrcp.f32 %v838_v51  ;;  %v835_v52 = vpop.xlane.xlu0 %834 }
 0x3c5   :  { %4344 = vrcp.f32 %v835_v52 }
 0x3c7   :  { %v844_v53 = vpop.xlane.xlu1 %843 }
 0x3c8   :  { %4346 = vrcp.f32 %v844_v53  ;;  %v841_v54 = vpop.xlane.xlu0 %840 }
 0x3c9   :  { %v4339_v55 = vpop.eup %4338  ;;  %4348 = vrcp.f32 %v841_v54 }
 0x3ca   :  { %v857_v56 = vmul.f32 %v4339_v55, %v4323_v28 }
 0x3cb   :  { %v1397_v6 = vpop.permute.xlu1 %1396 }
 0x3cc   :  { %v847_v57 = vpop.xlane.xlu0 %846  ;;  %4083 = vmatmul.mubr.msk.f32.vlgmr.msra.gmra.mxu1 %vm169_vm2, %v857_v56 }
 0x3cd   :  { %v4341_v58 = vpop.eup %4340  ;;  %4350 = vrcp.f32 %v847_v57  ;;  %4091 = vmatpush3.msra.mxu1 %v1093_v45  ;;  %4092 = vmatprep.mubr.msk.f32.mxu1 %vm4473_vm1, %v4470_v16 }
 0x3ce   :  { %v858_v59 = vmul.f32 %v4341_v58, %v4325_v32  ;;  %4100 = vmatprep.subr.mxu1 %v4470_v16 }
 0x3d0   :  { %4088 = vmatmul.mubr.msk.f32.vlgmr.msra.gmra.mxu0 %vm169_vm2, %v858_v59  ;;  %v1321_v0 = vpop.permute.xlu0 %1320 }
 0x3d1   :  { %v4343_v60 = vpop.eup %4342  ;;  %4096 = vmatpush3.msra.mxu0 %v1169_v25  ;;  %4097 = vmatprep.mubr.msk.f32.mxu0 %vm4473_vm1, %v4470_v16 }
 0x3d2   :  { %v4345_v61 = vpop.eup %4344  ;;  %4105 = vmatprep.subr.mxu0 %v4470_v16  ;;  %v860_v62 = vmul.f32 %v4343_v60, %v4327_v34 }
 0x3d3   :  { %v859_v63 = vmul.f32 %v4345_v61, %v4329_v35 }
 0x3d4   :  { %4098 = vmatmul.mubr.msk.f32.vlgmr.msra.gmra.mxu0 %vm169_vm2, %v860_v62 }
 0x3d5   :  { %v4347_v1 = vpop.eup %4346  ;;  %4093 = vmatmul.mubr.msk.f32.vlgmr.msra.gmra.mxu1 %vm169_vm2, %v859_v63  ;;  %4106 = vmatpush3.msra.mxu0 %v1321_v0 }
 0x3d6   :  { %v4349_v2 = vpop.eup %4348  ;;  %4101 = vmatpush3.msra.mxu1 %v1245_v46  ;;  %4102 = vmatprep.mubr.msk.f32.mxu1 %vm4473_vm1, %v4470_v16  ;;  %v862_v3 = vmul.f32 %v4347_v1, %v4331_v38  ;;  %v57_v1 = vld [vmem:[#allocation5 + $0x68] sm:$0xff] }
 0x3d7   :  { %4107 = vmatprep.mubr.msk.f32.mxu0 %vm4473_vm1, %v4470_v16  ;;  %4110 = vmatprep.subr.mxu1 %v4470_v16  ;;  %v861_v4 = vmul.f32 %v4349_v2, %v4648_v39  ;;  %v55_v2 = vld [vmem:[#allocation5 + $0x58] sm:$0xff] }
 0x3d8   :  { %4108 = vmatmul.mubr.msk.f32.vlgmr.msra.gmra.mxu0 %vm169_vm2, %v862_v3  ;;  %4115 = vmatprep.subr.mxu0 %v53_v15  ;;  %v54_v3 = vld [vmem:[#allocation5 + $0x50] sm:$0xff] }
 0x3d9   :  { %4103 = vmatmul.mubr.msk.f32.vlgmr.msra.gmra.mxu1 %vm169_vm2, %v861_v4  ;;  %4116 = vmatpush3.msra.mxu0 %v53_v15  ;;  %v65_v4 = vld [vmem:[#allocation5 + $0xa8] sm:$0xff] }
 0x3da   :  { %v4351_v7 = vpop.eup %4350  ;;  %4111 = vmatpush3.msra.mxu1 %v1397_v6  ;;  %4112 = vmatprep.mubr.msk.f32.mxu1 %vm4473_vm1, %v4470_v16  ;;  %v64_v6 = vld [vmem:[#allocation5 + $0xa0] sm:$0xff] }
 0x3db   :  { %v863_v8 = vmul.f32 %v4351_v7, %v4653_v42  ;;  %4117 = vmatprep.subr.mxu0 %v52_v18  ;;  %4126 = vmatprep.subr.mxu1 %v57_v1  ;;  %v63_v7 = vld [vmem:[#allocation5 + $0x98] sm:$0xff] }
 0x3dc   :  { %4118 = vmatpush3.msra.mxu0 %v52_v18 }
 0x3dd   :  { %4113 = vmatmul.mubr.msk.f32.vlgmr.msra.gmra.mxu1 %vm169_vm2, %v863_v8  ;;  %4119 = vmatprep.subr.mxu0 %v51_v19  ;;  %v62_v8 = vld [vmem:[#allocation5 + $0x90] sm:$0xff] }
 0x3de   :  { %4120 = vmatpush3.msra.mxu0 %v51_v19  ;;  %4127 = vmatpush3.msra.mxu1 %v57_v1  ;;  %v1845_v1 = vld [vmem:[#allocation5 + $0xc8] sm:$0xff] }
 0x3df   :  { %4121 = vmatprep.subr.mxu0 %v50_v22 }
 0x3e0   :  { %4122 = vmatpush3.msra.mxu0 %v50_v22 }
 0x3e1   :  { %4137 = vmatprep.subr.mxu0 %v65_v4 }
 0x43c   :  { %v936_v10 = vpop.f32.mrf.mxu0 }
 0x43e   :  { %v4079_v14 = vpop.f32.mrf.mxu0 }
 0x48c   :  { %v1012_v17 = vpop.f32.mrf.mxu1 }
 0x48d   :  { %1473 = vrot.lane.b32.xlu0 %v1012_v17, %s4468_s13 }
 0x48e   :  { %v4084_v20 = vpop.f32.mrf.mxu1 }
 0x48f   :  { %v1620_v20 = vsub.s32 4, %v4511_v11 }
 0x490   :  { %v1088_v21 = vpop.f32.mrf.mxu0 }
 0x491   :  { %1477 = vrot.lane.b32.xlu1 %v1088_v21, %s4477_s24  ;;  %v1626_v21 = vsub.s32 5, %v4511_v11  ;;  %v1621_v22 = vrot.slane %v4516_v13, %v1620_v20 }
 0x492   :  { %v4089_v23 = vpop.f32.mrf.mxu0 }
 0x494   :  { %v1240_v26 = vpop.f32.mrf.mxu0 }
 0x495   :  { %v1164_v27 = vpop.f32.mrf.mxu1 }
 0x496   :  { %1481 = vrot.lane.b32.xlu1 %v1164_v27, %s4478_s25  ;;  %v4099_v28 = vpop.f32.mrf.mxu0  ;;  %v1627_v27 = vrot.slane %v4516_v13, %v1626_v21 }
 0x497   :  { %v4094_v29 = vpop.f32.mrf.mxu1 }
 0x498   :  { %v1392_v30 = vpop.f32.mrf.mxu0 }
 0x499   :  { %v1316_v31 = vpop.f32.mrf.mxu1 }
 0x49a   :  { %1490 = vrot.lane.b32.xlu0 %v1316_v31, %s4468_s13  ;;  %v4109_v32 = vpop.f32.mrf.mxu0 }
 0x49b   :  { %v4104_v33 = vpop.f32.mrf.mxu1 }
 0x49d   :  { %v1468_v34 = vpop.f32.mrf.mxu1 }
 0x49e   :  { %1498 = vrot.lane.b32.xlu1 %v1468_v34, %s4478_s25  ;;  %1494 = vrot.lane.b32.xlu0 %v1392_v30, %s4477_s24  ;;  %v61_v34 = vld [vmem:[#allocation5 + $0x88] sm:$0xff] }
 0x49f   :  { %v4114_v35 = vpop.f32.mrf.mxu1 }
 0x4a0   :  { %v60_v35 = vld [vmem:[#allocation5 + $0x80] sm:$0xff] }
 0x4ff   :  { %v1474_v37 = vpop.permute.xlu0 %1473 }
 0x500   :  { %v1484_v38 = vsel %vm169_vm2, %v936_v10, %v1474_v37  ;;  %v58_v37 = vld [vmem:[#allocation5 + $0x70] sm:$0xff] }
 0x503   :  { %v1478_v36 = vpop.permute.xlu1 %1477 }
 0x504   :  { %v1486_v39 = vsel %vm1485_vm3, %v1484_v38, %v1478_v36  ;;  %v59_v36 = vld [vmem:[#allocation5 + $0x78] sm:$0xff]  ;;  %v1632_v38 = vsub.s32 2, %v4511_v11 }
 0x508   :  { %v1482_v40 = vpop.permute.xlu1 %1481 }
 0x509   :  { %v1488_v41 = vsel %vm1487_vm4, %v1486_v39, %v1482_v40  ;;  %v1633_v39 = vrot.slane %v4516_v13, %v1632_v38 }
 0x50a   :  { %4123 = vmatprep.mubr.msk.f32.mxu0 %vm71_vm0, %v1488_v41 }
 0x50c   :  { %v1491_v42 = vpop.permute.xlu0 %1490 }
 0x50d   :  { %v1501_v43 = vsel %vm169_vm2, %v1240_v26, %v1491_v42 }
 0x510   :  { %v1499_v44 = vpop.permute.xlu1 %1498  ;;  %v1495_v45 = vpop.permute.xlu0 %1494 }
 0x511   :  { %v1502_v46 = vsel %vm1485_vm3, %v1501_v43, %v1495_v45 }
 0x512   :  { %v1503_v47 = vsel %vm1487_vm4, %v1502_v46, %v1499_v44  ;;  %v1719_v46 = vsub.s32 3, %v4511_v11 }
 0x513   :  { %4124 = vmatmul.mubr.msk.f32.vlgmr.msra.gmra.mxu0 %vm71_vm0, %v1503_v47 }
 0x514   :  { %4138 = vmatpush3.msra.mxu0 %v65_v4  ;;  %v1720_v47 = vrot.slane %v4516_v13, %v1719_v46 }
 0x515   :  { %4139 = vmatprep.subr.mxu0 %v64_v6 }
 0x516   :  { %4140 = vmatpush3.msra.mxu0 %v64_v6 }
 0x517   :  { %4141 = vmatprep.subr.mxu0 %v63_v7 }
 0x518   :  { %4142 = vmatpush3.msra.mxu0 %v63_v7 }
 0x519   :  { %4143 = vmatprep.subr.mxu0 %v62_v8 }
 0x51a   :  { %4144 = vmatpush3.msra.mxu0 %v62_v8 }
 0x51b   :  { %4145 = vmatprep.subr.mxu0 %v61_v34 }
 0x51c   :  { %4146 = vmatpush3.msra.mxu0 %v61_v34 }
 0x51d   :  { %4147 = vmatprep.subr.mxu0 %v60_v35 }
 0x51e   :  { %4148 = vmatpush3.msra.mxu0 %v60_v35 }
 0x51f   :  { %4149 = vmatprep.subr.mxu0 %v59_v36 }
 0x520   :  { %4150 = vmatpush3.msra.mxu0 %v59_v36 }
 0x521   :  { %4151 = vmatprep.subr.mxu0 %v58_v37 }
 0x522   :  { %4152 = vmatpush3.msra.mxu0 %v58_v37 }
 0x523   :  { %4177 = vmatprep.subr.mxu0 %v4470_v16 }
 0x5d3   :  { %v4125_v25 = vpop.f32.mrf.mxu0 }
 0x5d4   :  { %v1586_v50 = vadd.f32 %v4125_v25, %v1507_v49 }
 0x5d5   :  { %v1580_v24 = vpop.f32.mrf.mxu0 }
 0x5d6   :  { %v1581_v51 = vadd.f32 %v1580_v24, %v1507_v49  ;;  %v1590_v52 = vadd.f32 %v1586_v50, %v4507_v9 }
 0x5d8   :  { %v1594_v53 = vsel %vm71_vm0, %v1590_v52, 0.0  ;;  %v1589_v54 = vadd.f32 %v1581_v51, %v4503_v5  ;;  %v56_v5 = vld [vmem:[#allocation5 + $0x60] sm:$0xff] }
 0x5d9   :  { %1595 = vadd.xlane.f32.xlu1 %v1594_v53  ;;  %4128 = vmatprep.subr.mxu1 %v56_v5 }
 0x5da   :  { %v1591_v55 = vsel %vm71_vm0, %v1589_v54, 0.0  ;;  %4129 = vmatpush3.msra.mxu1 %v56_v5  ;;  %v1844_v5 = vld [vmem:[#allocation5 + $0xc0] sm:$0xff] }
 0x5db   :  { %1592 = vadd.xlane.f32.xlu0 %v1591_v55  ;;  %4130 = vmatprep.subr.mxu1 %v55_v2 }
 0x5dc   :  { %4131 = vmatpush3.msra.mxu1 %v55_v2  ;;  %v1843_v2 = vld [vmem:[#allocation5 + $0xb8] sm:$0xff] }
 0x5dd   :  { %4132 = vmatprep.subr.mxu1 %v54_v3 }
 0x5de   :  { %4133 = vmatpush3.msra.mxu1 %v54_v3 }
 0x662   :  { %v1596_v56 = vpop.xlane.xlu1 %1595 }
 0x663   :  { %v1599_v57 = vmul.f32 0.03125, %v1596_v56 }
 0x664   :  { %v1593_v58 = vpop.xlane.xlu0 %1592 }
 0x665   :  { %v1598_v59 = vmul.f32 0.03125, %v1593_v58  ;;  %v1601_v60 = vsub.f32 %v1590_v52, %v1599_v57 }
 0x667   :  { %v1600_v61 = vsub.f32 %v1589_v54, %v1598_v59  ;;  %v1603_v0 = vmul.f32 %v1601_v60, %v1601_v60 }
 0x669   :  { %v1602_v62 = vmul.f32 %v1600_v61, %v1600_v61  ;;  %v1607_v9 = vsel %vm71_vm0, %v1603_v0, 0.0 }
 0x66b   :  { %v1604_v63 = vsel %vm71_vm0, %v1602_v62, 0.0 }
 0x66c   :  { %1605 = vadd.xlane.f32.xlu0 %v1604_v63 }
 0x670   :  { %1608 = vadd.xlane.f32.xlu0 %v1607_v9  ;;  %v1846_v9 = vld [vmem:[#allocation5 + $0xd0] sm:$0xff] }
 0x671   :  { %4156 = vmatprep.subr.mxu1 %v1846_v9 }
 0x6f5   :  { %v1606_v10 = vpop.xlane.xlu0 %1605 }
 0x6f6   :  { %v1610_v14 = vmul.f32 0.03125, %v1606_v10 }
 0x6f8   :  { %v1612_v15 = vadd.f32 1e-05, %v1610_v14  ;;  %v1833_v14 = vsub.s32 6, %v4511_v11 }
 0x6f9   :  { %v1609_v17 = vpop.xlane.xlu0 %1608 }
 0x6fa   :  { %4352 = vrsqrt.f32 %v1612_v15  ;;  %v1611_v18 = vmul.f32 0.03125, %v1609_v17  ;;  %v1834_v17 = vrot.slane %v4516_v13, %v1833_v14 }
 0x6fc   :  { %v1613_v19 = vadd.f32 1e-05, %v1611_v18  ;;  %v1839_v18 = vsub.s32 7, %v4511_v11 }
 0x6fe   :  { %4354 = vrsqrt.f32 %v1613_v19 }
 0x707   :  { %v4353_v23 = vpop.eup %4352 }
 0x708   :  { %v1616_v26 = vmul.f32 %v4353_v23, %v1600_v61 }
 0x70a   :  { %v1622_v28 = vmul.f32 %v1621_v22, %v1616_v26 }
 0x70b   :  { %v4355_v29 = vpop.eup %4354 }
 0x70c   :  { %v1617_v30 = vmul.f32 %v4355_v29, %v1601_v60  ;;  %v1628_v31 = vadd.f32 %v1627_v27, %v1622_v28 }
 0x70e   :  { %v1623_v32 = vmul.f32 %v1621_v22, %v1617_v30  ;;  %4134 = vmatprep.mubr.msk.f32.mxu1 %vm71_vm0, %v1628_v31 }
 0x710   :  { %v1629_v33 = vadd.f32 %v1627_v27, %v1623_v32  ;;  %v1840_v27 = vrot.slane %v4516_v13, %v1839_v18 }
 0x712   :  { %4135 = vmatmul.mubr.msk.f32.vlgmr.msra.gmra.mxu1 %vm71_vm0, %v1629_v33 }
 0x713   :  { %4157 = vmatpush3.msra.mxu1 %v1846_v9 }
 0x714   :  { %4158 = vmatprep.subr.mxu1 %v1845_v1 }
 0x715   :  { %4159 = vmatpush3.msra.mxu1 %v1845_v1 }
 0x716   :  { %4160 = vmatprep.subr.mxu1 %v1844_v5 }
 0x717   :  { %4161 = vmatpush3.msra.mxu1 %v1844_v5 }
 0x718   :  { %4162 = vmatprep.subr.mxu1 %v1843_v2 }
 0x719   :  { %4163 = vmatpush3.msra.mxu1 %v1843_v2 }
 0x71a   :  { %4167 = vmatprep.subr.mxu1 %v4470_v16 }
 0x7d2   :  { %v4136_v40 = vpop.f32.mrf.mxu1 }
 0x7d3   :  { %v1712_v41 = vadd.f32 %v4136_v40, %v1633_v39 }
 0x7d4   :  { %v1706_v42 = vpop.f32.mrf.mxu1 }
 0x7d5   :  { %v1707_v43 = vadd.f32 %v1706_v42, %v1633_v39  ;;  %v1716_v45 = vmax.f32 %v1712_v41, 0.0 }
 0x7d7   :  { %v1715_v44 = vmax.f32 %v1707_v43, 0.0 }
 0x7d9   :  { %4153 = vmatprep.mubr.msk.f32.mxu0 %vm1721_vm5, %v1715_v44 }
 0x7da   :  { %4154 = vmatmul.mubr.msk.f32.vlgmr.msra.gmra.mxu0 %vm1721_vm5, %v1716_v45 }
 0x7db   :  { %4179 = vmatprep.mubr.msk.f32.mxu0 %vm4473_vm1, %v4470_v16 }
 0x89a   :  { %v4155_v49 = vpop.f32.mrf.mxu0 }
 0x89b   :  { %v1800_v25 = vadd.f32 %v4155_v49, %v1720_v47 }
 0x89c   :  { %v1794_v50 = vpop.f32.mrf.mxu0 }
 0x89d   :  { %v1795_v24 = vadd.f32 %v1794_v50, %v1720_v47  ;;  %v1804_v51 = vadd.f32 %v1800_v25, %v1629_v33 }
 0x89f   :  { %v1808_v52 = vsel %vm71_vm0, %v1804_v51, 0.0  ;;  %v1803_v53 = vadd.f32 %v1795_v24, %v1628_v31  ;;  %v4759_v31 = vld [vmem:[#allocation5 + $0x158] sm:$0xff] }
 0x8a0   :  { %1809 = vadd.xlane.f32.xlu0 %v1808_v52  ;;  %v1867_v13 = vrot.slane %v4759_v31, %v4514_v12 }
 0x8a1   :  { %v1805_v54 = vsel %vm71_vm0, %v1803_v53, 0.0 }
 0x8a2   :  { %1806 = vadd.xlane.f32.xlu1 %v1805_v54 }
 0x929   :  { %v1810_v55 = vpop.xlane.xlu0 %1809 }
 0x92a   :  { %v1812_v56 = vmul.f32 0.03125, %v1810_v55 }
 0x92b   :  { %v1807_v57 = vpop.xlane.xlu1 %1806 }
 0x92c   :  { %v1814_v58 = vsub.f32 %v1804_v51, %v1812_v56  ;;  %v1811_v59 = vmul.f32 0.03125, %v1807_v57 }
 0x92e   :  { %v1813_v60 = vsub.f32 %v1803_v53, %v1811_v59  ;;  %v1816_v61 = vmul.f32 %v1814_v58, %v1814_v58 }
 0x930   :  { %v1820_v62 = vsel %vm71_vm0, %v1816_v61, 0.0  ;;  %v1815_v63 = vmul.f32 %v1813_v60, %v1813_v60 }
 0x931   :  { %1821 = vadd.xlane.f32.xlu0 %v1820_v62 }
 0x932   :  { %v1817_v0 = vsel %vm71_vm0, %v1815_v63, 0.0 }
 0x933   :  { %1818 = vadd.xlane.f32.xlu1 %v1817_v0 }
 0x9ba   :  { %v1822_v3 = vpop.xlane.xlu0 %1821 }
 0x9bb   :  { %v1824_v4 = vmul.f32 0.03125, %v1822_v3 }
 0x9bc   :  { %v1819_v6 = vpop.xlane.xlu1 %1818 }
 0x9bd   :  { %v1826_v7 = vadd.f32 1e-05, %v1824_v4  ;;  %v1823_v8 = vmul.f32 0.03125, %v1819_v6 }
 0x9bf   :  { %4356 = vrsqrt.f32 %v1826_v7  ;;  %v1825_v10 = vadd.f32 1e-05, %v1823_v8 }
 0x9c1   :  { %4358 = vrsqrt.f32 %v1825_v10 }
 0x9cc   :  { %v4357_v15 = vpop.eup %4356 }
 0x9cd   :  { %v1830_v19 = vmul.f32 %v4357_v15, %v1814_v58 }
 0x9ce   :  { %v4359_v22 = vpop.eup %4358 }
 0x9cf   :  { %v1829_v23 = vmul.f32 %v4359_v22, %v1813_v60  ;;  %v1836_v26 = vmul.f32 %v1834_v17, %v1830_v19 }
 0x9d1   :  { %v1835_v28 = vmul.f32 %v1834_v17, %v1829_v23  ;;  %v4751_v30 = vadd.f32 %v1840_v27, %v1836_v26 }
 0x9d3   :  { %v4749_v29 = vadd.f32 %v1840_v27, %v1835_v28 }
 0x9d5   :  { %4164 = vmatprep.mubr.msk.f32.mxu1 %vm71_vm0, %v4749_v29 }
 0x9d6   :  { %4165 = vmatmul.mubr.msk.f32.vlgmr.msra.gmra.mxu1 %vm71_vm0, %v4751_v30 }
 0x9d7   :  { %4169 = vmatprep.mubr.msk.f32.mxu1 %vm4473_vm1, %v4470_v16 }
 0xa96   :  { %v4166_v32 = vpop.f32.mrf.mxu1 }
 0xa97   :  { %v4769_v35 = vadd.f32 %v4166_v32, %v1867_v13 }
 0xa98   :  { %v1940_v33 = vpop.f32.mrf.mxu1 }
 0xa99   :  { %v4763_v34 = vadd.f32 %v1940_v33, %v1867_v13 }
 0xa9b   :  { %1952 = vrot.lane.b32.xlu0 %v4763_v34, %s4474_s21  ;;  %1950 = vrot.lane.b32.xlu1 %v4763_v34, %s4472_s1 }
 0xa9f   :  { %1959 = vrot.lane.b32.xlu0 %v4769_v35, %s4474_s21  ;;  %1954 = vrot.lane.b32.xlu1 %v4763_v34, %s4471_s0 }
 0xaa3   :  { %1963 = vrot.lane.b32.xlu0 %v4763_v34, %s4475_s22  ;;  %1957 = vrot.lane.b32.xlu1 %v4769_v35, %s4472_s1 }
 0xaa7   :  { %1961 = vrot.lane.b32.xlu1 %v4769_v35, %s4471_s0 }
 0xb0d   :  { %v4781_v36 = vpop.permute.xlu0 %1952  ;;  %v4783_v37 = vpop.permute.xlu1 %1950 }
 0xb0e   :  { %2115 = vrot.lane.b32.xlu0 %v4781_v36, %s4475_s22  ;;  %2039 = vrot.lane.b32.xlu1 %v4783_v37, %s4475_s22 }
 0xb11   :  { %v4789_v39 = vpop.permute.xlu0 %1959  ;;  %v4791_v40 = vpop.permute.xlu1 %1954 }
 0xb12   :  { %2267 = vrot.lane.b32.xlu0 %v4769_v35, %s4475_s22  ;;  %2191 = vrot.lane.b32.xlu1 %v4791_v40, %s4475_s22 }
 0xb15   :  { %v1964_v41 = vpop.permute.xlu0 %1963  ;;  %v4797_v42 = vpop.permute.xlu1 %1957 }
 0xb16   :  { %2419 = vrot.lane.b32.xlu0 %v4789_v39, %s4475_s22  ;;  %4168 = vmatpush3.xpose.msk.msra.mxu1 %vm169_vm2, %v1964_v41 }
 0xb17   :  { %2343 = vrot.lane.b32.xlu1 %v4797_v42, %s4475_s22  ;;  %4172 = vmatprep.subr.mxu1 %v4470_v16 }
 0xb19   :  { %4170 = vmatmul.mubr.msk.f32.vlgmr.msra.gmra.mxu1 %vm169_vm2, %v4763_v34  ;;  %v4807_v43 = vpop.permute.xlu1 %1961 }
 0xb1a   :  { %4174 = vmatprep.mubr.msk.f32.mxu1 %vm4473_vm1, %v4470_v16 }
 0xb1b   :  { %2495 = vrot.lane.b32.xlu1 %v4807_v43, %s4475_s22 }
 0xb80   :  { %v2116_v44 = vpop.permute.xlu0 %2115  ;;  %v2040_v45 = vpop.permute.xlu1 %2039 }
 0xb81   :  { %4173 = vmatpush3.xpose.msk.msra.mxu1 %vm169_vm2, %v2040_v45  ;;  %4178 = vmatpush3.xpose.msk.msra.mxu0 %vm169_vm2, %v2116_v44 }
 0xb82   :  { %4187 = vmatprep.subr.mxu0 %v4470_v16  ;;  %4182 = vmatprep.subr.mxu1 %v4470_v16 }
 0xb84   :  { %4180 = vmatmul.mubr.msk.f32.vlgmr.msra.gmra.mxu0 %vm169_vm2, %v4781_v36  ;;  %v2268_v47 = vpop.permute.xlu0 %2267  ;;  %4175 = vmatmul.mubr.msk.f32.vlgmr.msra.gmra.mxu1 %vm169_vm2, %v4783_v37  ;;  %v2192_v49 = vpop.permute.xlu1 %2191 }
 0xb85   :  { %4183 = vmatpush3.xpose.msk.msra.mxu1 %vm169_vm2, %v2192_v49  ;;  %4188 = vmatpush3.xpose.msk.msra.mxu0 %vm169_vm2, %v2268_v47 }
 0xb86   :  { %4184 = vmatprep.mubr.msk.f32.mxu1 %vm4473_vm1, %v4470_v16  ;;  %4189 = vmatprep.mubr.msk.f32.mxu0 %vm4473_vm1, %v4470_v16 }
 0xb87   :  { %4197 = vmatprep.subr.mxu0 %v4470_v16  ;;  %4192 = vmatprep.subr.mxu1 %v4470_v16 }
 0xb88   :  { %4190 = vmatmul.mubr.msk.f32.vlgmr.msra.gmra.mxu0 %vm169_vm2, %v4769_v35  ;;  %v2420_v25 = vpop.permute.xlu0 %2419  ;;  %4185 = vmatmul.mubr.msk.f32.vlgmr.msra.gmra.mxu1 %vm169_vm2, %v4791_v40 }
 0xb89   :  { %v2344_v50 = vpop.permute.xlu1 %2343  ;;  %4198 = vmatpush3.xpose.msk.msra.mxu0 %vm169_vm2, %v2420_v25  ;;  %4194 = vmatprep.mubr.msk.f32.mxu1 %vm4473_vm1, %v4470_v16 }
 0xb8a   :  { %4193 = vmatpush3.xpose.msk.msra.mxu1 %vm169_vm2, %v2344_v50  ;;  %4199 = vmatprep.mubr.msk.f32.mxu0 %vm4473_vm1, %v4470_v16 }
 0xb8b   :  { %4202 = vmatprep.subr.mxu1 %v4470_v16  ;;  %4207 = vmatprep.subr.mxu0 %v4470_v16 }
 0xb8c   :  { %4200 = vmatmul.mubr.msk.f32.vlgmr.msra.gmra.mxu0 %vm169_vm2, %v4789_v39 }
 0xb8d   :  { %4195 = vmatmul.mubr.msk.f32.vlgmr.msra.gmra.mxu1 %vm169_vm2, %v4797_v42  ;;  %v2496_v24 = vpop.permute.xlu1 %2495  ;;  %4209 = vmatprep.mubr.msk.f32.mxu0 %vm4473_vm1, %v4470_v16 }
 0xb8e   :  { %4203 = vmatpush3.xpose.msk.msra.mxu1 %vm169_vm2, %v2496_v24  ;;  %4204 = vmatprep.mubr.msk.f32.mxu1 %vm4473_vm1, %v4470_v16 }
 0xb8f   :  { %4212 = vmatprep.subr.mxu1 %v4470_v16 }
 0xb91   :  { %4205 = vmatmul.mubr.msk.f32.vlgmr.msra.gmra.mxu1 %vm169_vm2, %v4807_v43 }
 0xb92   :  { %4214 = vmatprep.mubr.msk.f32.mxu1 %vm4473_vm1, %v4470_v16 }
 0xbd9   :  { %v2035_v51 = vpop.f32.mrf.mxu1 }
 0xbda   :  { %v2571_v52 = vsel %vm169_vm2, %v2035_v51, -inf }
 0xbdb   :  { %2572 = vmax.xlane.f32.xlu0 %v2571_v52  ;;  %v4171_v53 = vpop.f32.mrf.mxu1 }
 0xc44   :  { %v2111_v54 = vpop.f32.mrf.mxu1  ;;  %v2187_v55 = vpop.f32.mrf.mxu0 }
 0xc45   :  { %v2577_v56 = vsel %vm169_vm2, %v2187_v55, -inf  ;;  %v2574_v57 = vsel %vm169_vm2, %v2111_v54, -inf }
 0xc46   :  { %2578 = vmax.xlane.f32.xlu0 %v2577_v56  ;;  %v4181_v58 = vpop.f32.mrf.mxu0  ;;  %2575 = vmax.xlane.f32.xlu1 %v2574_v57  ;;  %v4176_v59 = vpop.f32.mrf.mxu1 }
 0xc48   :  { %v2263_v60 = vpop.f32.mrf.mxu1  ;;  %v2339_v61 = vpop.f32.mrf.mxu0 }
 0xc49   :  { %v2583_v62 = vsel %vm169_vm2, %v2339_v61, -inf  ;;  %v2580_v63 = vsel %vm169_vm2, %v2263_v60, -inf }
 0xc4a   :  { %v4191_v0 = vpop.f32.mrf.mxu0  ;;  %2584 = vmax.xlane.f32.xlu1 %v2583_v62  ;;  %2581 = vmax.xlane.f32.xlu0 %v2580_v63  ;;  %v4186_v9 = vpop.f32.mrf.mxu1 }
 0xc4c   :  { %v2491_v1 = vpop.f32.mrf.mxu0 }
 0xc4d   :  { %v2415_v5 = vpop.f32.mrf.mxu1  ;;  %v2589_v2 = vsel %vm169_vm2, %v2491_v1, -inf }
 0xc4e   :  { %v4201_v3 = vpop.f32.mrf.mxu0  ;;  %2590 = vmax.xlane.f32.xlu1 %v2589_v2  ;;  %v2586_v4 = vsel %vm169_vm2, %v2415_v5, -inf }
 0xc4f   :  { %2587 = vmax.xlane.f32.xlu0 %v2586_v4  ;;  %v4196_v6 = vpop.f32.mrf.mxu1 }
 0xc51   :  { %v2567_v7 = vpop.f32.mrf.mxu1 }
 0xc52   :  { %v2592_v8 = vsel %vm169_vm2, %v2567_v7, -inf }
 0xc53   :  { %2593 = vmax.xlane.f32.xlu0 %v2592_v8  ;;  %v4206_v10 = vpop.f32.mrf.mxu1 }
 0xc5f   :  { %2659 = vrot.lane.b32.xlu1 %v4763_v34, %s4476_s23 }
 0xc63   :  { %2811 = vrot.lane.b32.xlu1 %v4781_v36, %s4476_s23 }
 0xc64   :  { %v2573_v15 = vpop.xlane.xlu0 %2572 }
 0xc65   :  { %v2595_v17 = vsub.f32 %v2035_v51, %v2573_v15 }
 0xc67   :  { %2887 = vrot.lane.b32.xlu1 %v4791_v40, %s4476_s23  ;;  %v2603_v19 = vmul.f32 1.442695, %v2595_v17 }
 0xc69   :  { %2735 = vrot.lane.b32.xlu0 %v4783_v37, %s4476_s23  ;;  %4360 = vpow2.f32 %v2603_v19 }
 0xc6b   :  { %3039 = vrot.lane.b32.xlu1 %v4797_v42, %s4476_s23 }
 0xc6d   :  { %2963 = vrot.lane.b32.xlu0 %v4769_v35, %s4476_s23 }
 0xc76   :  { %v4875_v22 = vpop.eup %4360 }
 0xc77   :  { %v2619_v23 = vsel %vm169_vm2, %v4875_v22, 0.0 }
 0xc8f   :  { %2620 = vadd.xlane.f32.xlu1 %v2619_v23 }
 0xccf   :  { %v2579_v26 = vpop.xlane.xlu0 %2578  ;;  %v2576_v27 = vpop.xlane.xlu1 %2575 }
 0xcd0   :  { %v2597_v28 = vsub.f32 %v2187_v55, %v2579_v26  ;;  %v2596_v32 = vsub.f32 %v2111_v54, %v2576_v27 }
 0xcd2   :  { %v2607_v13 = vmul.f32 1.442695, %v2597_v28  ;;  %v2605_v33 = vmul.f32 1.442695, %v2596_v32 }
 0xcd3   :  { %v2582_v34 = vpop.xlane.xlu0 %2581  ;;  %v2585_v36 = vpop.xlane.xlu1 %2584 }
 0xcd4   :  { %4362 = vpow2.f32 %v2607_v13  ;;  %v2598_v35 = vsub.f32 %v2263_v60, %v2582_v34  ;;  %v2599_v37 = vsub.f32 %v2339_v61, %v2585_v36 }
 0xcd5   :  { %4364 = vpow2.f32 %v2605_v33 }
 0xcd6   :  { %v2609_v40 = vmul.f32 1.442695, %v2598_v35  ;;  %v2611_v41 = vmul.f32 1.442695, %v2599_v37 }
 0xcd7   :  { %v2591_v42 = vpop.xlane.xlu1 %2590 }
 0xcd8   :  { %4366 = vpow2.f32 %v2609_v40  ;;  %v2588_v44 = vpop.xlane.xlu0 %2587  ;;  %v2601_v45 = vsub.f32 %v2491_v1, %v2591_v42 }
 0xcd9   :  { %4368 = vpow2.f32 %v2611_v41  ;;  %v2600_v47 = vsub.f32 %v2415_v5, %v2588_v44 }
 0xcda   :  { %v2615_v49 = vmul.f32 1.442695, %v2601_v45 }
 0xcdb   :  { %v2613_v25 = vmul.f32 1.442695, %v2600_v47  ;;  %v2660_v50 = vpop.permute.xlu1 %2659 }
 0xcdc   :  { %4370 = vpow2.f32 %v2615_v49  ;;  %v2594_v24 = vpop.xlane.xlu0 %2593  ;;  %4208 = vmatpush3.msra.mxu0 %v2660_v50  ;;  %v1850_v50 = vld [vmem:[#allocation5 + $0xf0] sm:$0xff] }
 0xcdd   :  { %4372 = vpow2.f32 %v2613_v25  ;;  %v2602_v51 = vsub.f32 %v2567_v7, %v2594_v24  ;;  %4217 = vmatprep.subr.mxu0 %v4470_v16  ;;  %v1849_v24 = vld [vmem:[#allocation5 + $0xe8] sm:$0xff] }
 0xcdf   :  { %v2617_v52 = vmul.f32 1.442695, %v2602_v51  ;;  %v2812_v2 = vpop.permute.xlu1 %2811  ;;  %v1848_v51 = vld [vmem:[#allocation5 + $0xe0] sm:$0xff] }
 0xce0   :  { %v2736_v53 = vpop.permute.xlu0 %2735 }
 0xce1   :  { %v4363_v54 = vpop.eup %4362  ;;  %4374 = vpow2.f32 %v2617_v52  ;;  %4213 = vmatpush3.msra.mxu1 %v2736_v53 }
 0xce2   :  { %v4365_v55 = vpop.eup %4364  ;;  %v2625_v56 = vsel %vm169_vm2, %v4363_v54, 0.0  ;;  %4222 = vmatprep.subr.mxu1 %v4470_v16 }
 0xce3   :  { %2626 = vadd.xlane.f32.xlu1 %v2625_v56  ;;  %v2622_v57 = vsel %vm169_vm2, %v4365_v55, 0.0  ;;  %v2888_v3 = vpop.permute.xlu1 %2887 }
 0xce4   :  { %2623 = vadd.xlane.f32.xlu0 %v2622_v57 }
 0xce5   :  { %v4367_v58 = vpop.eup %4366 }
 0xce6   :  { %v4369_v59 = vpop.eup %4368  ;;  %v2628_v60 = vsel %vm169_vm2, %v4367_v58, 0.0 }
 0xce7   :  { %v2631_v61 = vsel %vm169_vm2, %v4369_v59, 0.0  ;;  %v3040_v4 = vpop.permute.xlu1 %3039 }
 0xce8   :  { %2629 = vadd.xlane.f32.xlu0 %v2628_v60  ;;  %2632 = vadd.xlane.f32.xlu1 %v2631_v61 }
 0xce9   :  { %v4885_v62 = vpop.eup %4370 }
 0xcea   :  { %v4373_v63 = vpop.eup %4372  ;;  %v2637_v0 = vsel %vm169_vm2, %v4885_v62, 0.0 }
 0xceb   :  { %v2634_v9 = vsel %vm169_vm2, %v4373_v63, 0.0 }
 0xcec   :  { %2635 = vadd.xlane.f32.xlu0 %v2634_v9  ;;  %2638 = vadd.xlane.f32.xlu1 %v2637_v0 }
 0xcee   :  { %v4890_v1 = vpop.eup %4374 }
 0xcef   :  { %v2640_v5 = vsel %vm169_vm2, %v4890_v1, 0.0 }
 0xcf0   :  { %2641 = vadd.xlane.f32.xlu0 %v2640_v5 }
 0xcfd   :  { %3191 = vrot.lane.b32.xlu1 %v4807_v43, %s4476_s23  ;;  %v2964_v43 = vpop.permute.xlu0 %2963 }
 0xd06   :  { %3115 = vrot.lane.b32.xlu0 %v4789_v39, %s4476_s23 }
 0xd18   :  { %v2621_v6 = vpop.xlane.xlu1 %2620 }
 0xd19   :  { %4376 = vrcp.f32 %v2621_v6 }
 0xd26   :  { %v4377_v7 = vpop.eup %4376 }
 0xd27   :  { %v2651_v8 = vmul.f32 %v4377_v7, %v4875_v22 }
 0xd29   :  { %4210 = vmatmul.mubr.msk.f32.vlgmr.msra.gmra.mxu0 %vm169_vm2, %v2651_v8 }
 0xd2a   :  { %4218 = vmatpush3.msra.mxu0 %v2812_v2  ;;  %4219 = vmatprep.mubr.msk.f32.mxu0 %vm4473_vm1, %v4470_v16 }
 0xd2b   :  { %4227 = vmatprep.subr.mxu0 %v4470_v16 }
 0xd6c   :  { %v2627_v10 = vpop.xlane.xlu1 %2626 }
 0xd6d   :  { %v2624_v15 = vpop.xlane.xlu0 %2623  ;;  %4378 = vrcp.f32 %v2627_v10 }
 0xd6e   :  { %4380 = vrcp.f32 %v2624_v15 }
 0xd71   :  { %v2630_v39 = vpop.xlane.xlu0 %2629  ;;  %v2633_v17 = vpop.xlane.xlu1 %2632 }
 0xd72   :  { %4382 = vrcp.f32 %v2630_v39 }
 0xd73   :  { %4384 = vrcp.f32 %v2633_v17 }
 0xd75   :  { %v2636_v19 = vpop.xlane.xlu0 %2635  ;;  %v2639_v23 = vpop.xlane.xlu1 %2638 }
 0xd76   :  { %4386 = vrcp.f32 %v2636_v19  ;;  %v3300_v19 = vrot.slane %v4759_v31, %v4703_v48 }
 0xd77   :  { %4388 = vrcp.f32 %v2639_v23 }
 0xd79   :  { %v2642_v22 = vpop.xlane.xlu0 %2641  ;;  %v3192_v44 = vpop.permute.xlu1 %3191 }
 0xd7a   :  { %v4379_v26 = vpop.eup %4378  ;;  %4390 = vrcp.f32 %v2642_v22 }
 0xd7b   :  { %v4381_v27 = vpop.eup %4380  ;;  %v2653_v28 = vmul.f32 %v4379_v26, %v4363_v54 }
 0xd7c   :  { %v2652_v32 = vmul.f32 %v4381_v27, %v4365_v55  ;;  %v1847_v55 = vld [vmem:[#allocation5 + $0xd8] sm:$0xff] }
 0xd7d   :  { %4220 = vmatmul.mubr.msk.f32.vlgmr.msra.gmra.mxu0 %vm169_vm2, %v2653_v28  ;;  %v3116_v37 = vpop.permute.xlu0 %3115 }
 0xd7e   :  { %4215 = vmatmul.mubr.msk.f32.vlgmr.msra.gmra.mxu1 %vm169_vm2, %v2652_v32  ;;  %4228 = vmatpush3.msra.mxu0 %v2964_v43 }
 0xd7f   :  { %v4383_v13 = vpop.eup %4382  ;;  %4223 = vmatpush3.msra.mxu1 %v2888_v3  ;;  %4224 = vmatprep.mubr.msk.f32.mxu1 %vm4473_vm1, %v4470_v16 }
 0xd80   :  { %v4385_v33 = vpop.eup %4384  ;;  %4229 = vmatprep.mubr.msk.f32.mxu0 %vm4473_vm1, %v4470_v16  ;;  %4232 = vmatprep.subr.mxu1 %v4470_v16  ;;  %v2654_v34 = vmul.f32 %v4383_v13, %v4367_v58 }
 0xd81   :  { %4237 = vmatprep.subr.mxu0 %v4470_v16  ;;  %v2655_v36 = vmul.f32 %v4385_v33, %v4369_v59 }
 0xd82   :  { %4225 = vmatmul.mubr.msk.f32.vlgmr.msra.gmra.mxu1 %vm169_vm2, %v2654_v34 }
 0xd83   :  { %v4387_v35 = vpop.eup %4386  ;;  %4230 = vmatmul.mubr.msk.f32.vlgmr.msra.gmra.mxu0 %vm169_vm2, %v2655_v36  ;;  %4233 = vmatpush3.msra.mxu1 %v3040_v4 }
 0xd84   :  { %v4389_v40 = vpop.eup %4388  ;;  %4238 = vmatpush3.msra.mxu0 %v3116_v37  ;;  %4234 = vmatprep.mubr.msk.f32.mxu1 %vm4473_vm1, %v4470_v16  ;;  %v2656_v41 = vmul.f32 %v4387_v35, %v4373_v63 }
 0xd85   :  { %4239 = vmatprep.mubr.msk.f32.mxu0 %vm4473_vm1, %v4470_v16  ;;  %4242 = vmatprep.subr.mxu1 %v4470_v16  ;;  %v2657_v42 = vmul.f32 %v4389_v40, %v4885_v62 }
 0xd86   :  { %4235 = vmatmul.mubr.msk.f32.vlgmr.msra.gmra.mxu1 %vm169_vm2, %v2656_v41  ;;  %4247 = vmatprep.subr.mxu0 %v1850_v50 }
 0xd87   :  { %v4391_v45 = vpop.eup %4390  ;;  %4240 = vmatmul.mubr.msk.f32.vlgmr.msra.gmra.mxu0 %vm169_vm2, %v2657_v42  ;;  %4243 = vmatpush3.msra.mxu1 %v3192_v44 }
 0xd88   :  { %4244 = vmatprep.mubr.msk.f32.mxu1 %vm4473_vm1, %v4470_v16  ;;  %v2658_v47 = vmul.f32 %v4391_v45, %v4890_v1  ;;  %4248 = vmatpush3.msra.mxu0 %v1850_v50  ;;  %v1862_v50 = vld [vmem:[#allocation5 + $0x150] sm:$0xff] }
 0xd89   :  { %4249 = vmatprep.subr.mxu0 %v1849_v24 }
 0xd8a   :  { %4245 = vmatmul.mubr.msk.f32.vlgmr.msra.gmra.mxu1 %vm169_vm2, %v2658_v47  ;;  %4250 = vmatpush3.msra.mxu0 %v1849_v24  ;;  %v1854_v47 = vld [vmem:[#allocation5 + $0x110] sm:$0xff]  ;;  %v1861_v24 = vld [vmem:[#allocation5 + $0x148] sm:$0xff] }
 0xd8b   :  { %4251 = vmatprep.subr.mxu0 %v1848_v51  ;;  %4258 = vmatprep.subr.mxu1 %v1854_v47 }
 0xd8c   :  { %4252 = vmatpush3.msra.mxu0 %v1848_v51  ;;  %4259 = vmatpush3.msra.mxu1 %v1854_v47  ;;  %v1860_v51 = vld [vmem:[#allocation5 + $0x140] sm:$0xff] }
 0xd8d   :  { %4253 = vmatprep.subr.mxu0 %v1847_v55  ;;  %v3634_v47 = vld [vmem:[#allocation5 + $0x160] sm:$0xff] }
 0xd8e   :  { %4254 = vmatpush3.msra.mxu0 %v1847_v55 }
 0xd8f   :  { %4269 = vmatprep.subr.mxu0 %v1862_v50 }
 0xde9   :  { %v2731_v49 = vpop.f32.mrf.mxu0 }
 0xdeb   :  { %v4211_v25 = vpop.f32.mrf.mxu0 }
 0xdec   :  { %v1851_v25 = vld [vmem:[#allocation5 + $0xf8] sm:$0xff] }
 0xe3d   :  { %v2883_v52 = vpop.f32.mrf.mxu0 }
 0xe3e   :  { %v2807_v53 = vpop.f32.mrf.mxu1  ;;  %3272 = vrot.lane.b32.xlu1 %v2883_v52, %s4477_s24  ;;  %v1859_v52 = vld [vmem:[#allocation5 + $0x138] sm:$0xff] }
 0xe3f   :  { %3268 = vrot.lane.b32.xlu0 %v2807_v53, %s4468_s13  ;;  %v4221_v54 = vpop.f32.mrf.mxu0 }
 0xe40   :  { %v4216_v56 = vpop.f32.mrf.mxu1 }
 0xe42   :  { %v2959_v57 = vpop.f32.mrf.mxu1 }
 0xe43   :  { %v3035_v58 = vpop.f32.mrf.mxu0  ;;  %3276 = vrot.lane.b32.xlu1 %v2959_v57, %s4478_s25 }
 0xe44   :  { %v4226_v59 = vpop.f32.mrf.mxu1 }
 0xe45   :  { %v4231_v60 = vpop.f32.mrf.mxu0  ;;  %v3413_v59 = vrot.slane %v4759_v31, %v1620_v20  ;;  %v1858_v20 = vld [vmem:[#allocation5 + $0x130] sm:$0xff] }
 0xe46   :  { %v3111_v61 = vpop.f32.mrf.mxu1 }
 0xe47   :  { %v3187_v62 = vpop.f32.mrf.mxu0  ;;  %3283 = vrot.lane.b32.xlu0 %v3111_v61, %s4468_s13 }
 0xe48   :  { %v4236_v63 = vpop.f32.mrf.mxu1 }
 0xe49   :  { %v4241_v0 = vpop.f32.mrf.mxu0 }
 0xe4a   :  { %v3263_v9 = vpop.f32.mrf.mxu1 }
 0xe4b   :  { %3287 = vrot.lane.b32.xlu0 %v3187_v62, %s4477_s24  ;;  %3291 = vrot.lane.b32.xlu1 %v3263_v9, %s4478_s25  ;;  %v3419_v62 = vrot.slane %v4759_v31, %v1626_v21  ;;  %v1856_v21 = vld [vmem:[#allocation5 + $0x120] sm:$0xff] }
 0xe4c   :  { %v4246_v1 = vpop.f32.mrf.mxu1 }
 0xeb0   :  { %v3273_v5 = vpop.permute.xlu1 %3272 }
 0xeb1   :  { %v3269_v2 = vpop.permute.xlu0 %3268 }
 0xeb2   :  { %v3279_v3 = vsel %vm169_vm2, %v2731_v49, %v3269_v2  ;;  %v1852_v49 = vld [vmem:[#allocation5 + $0x100] sm:$0xff] }
 0xeb3   :  { %v3280_v4 = vsel %vm1485_vm3, %v3279_v3, %v3273_v5  ;;  %v1857_v3 = vld [vmem:[#allocation5 + $0x128] sm:$0xff] }
 0xeb5   :  { %v3277_v6 = vpop.permute.xlu1 %3276 }
 0xeb6   :  { %v3281_v7 = vsel %vm1487_vm4, %v3280_v4, %v3277_v6  ;;  %v1855_v4 = vld [vmem:[#allocation5 + $0x118] sm:$0xff]  ;;  %v3425_v6 = vrot.slane %v4759_v31, %v1632_v38 }
 0xeb7   :  { %4255 = vmatprep.mubr.msk.f32.mxu0 %vm71_vm0, %v3281_v7 }
 0xeb9   :  { %v3284_v8 = vpop.permute.xlu0 %3283 }
 0xeba   :  { %v3294_v43 = vsel %vm169_vm2, %v3035_v58, %v3284_v8 }
 0xebd   :  { %v3288_v10 = vpop.permute.xlu0 %3287  ;;  %v3292_v15 = vpop.permute.xlu1 %3291 }
 0xebe   :  { %v3295_v39 = vsel %vm1485_vm3, %v3294_v43, %v3288_v10 }
 0xebf   :  { %v3296_v17 = vsel %vm1487_vm4, %v3295_v39, %v3292_v15 }
 0xec0   :  { %4256 = vmatmul.mubr.msk.f32.vlgmr.msra.gmra.mxu0 %vm71_vm0, %v3296_v17  ;;  %v3512_v17 = vrot.slane %v4759_v31, %v1719_v46 }
 0xec1   :  { %4270 = vmatpush3.msra.mxu0 %v1862_v50 }
 0xec2   :  { %4271 = vmatprep.subr.mxu0 %v1861_v24 }
 0xec3   :  { %4272 = vmatpush3.msra.mxu0 %v1861_v24 }
 0xec4   :  { %4273 = vmatprep.subr.mxu0 %v1860_v51 }
 0xec5   :  { %4274 = vmatpush3.msra.mxu0 %v1860_v51 }
 0xec6   :  { %4275 = vmatprep.subr.mxu0 %v1859_v52 }
 0xec7   :  { %4276 = vmatpush3.msra.mxu0 %v1859_v52  ;;  %v3625_v52 = vrot.slane %v4759_v31, %v1833_v14 }
 0xec8   :  { %4277 = vmatprep.subr.mxu0 %v1858_v20 }
 0xec9   :  { %4278 = vmatpush3.msra.mxu0 %v1858_v20 }
 0xeca   :  { %4279 = vmatprep.subr.mxu0 %v1857_v3 }
 0xecb   :  { %4280 = vmatpush3.msra.mxu0 %v1857_v3 }
 0xecc   :  { %4281 = vmatprep.subr.mxu0 %v1856_v21 }
 0xecd   :  { %4282 = vmatpush3.msra.mxu0 %v1856_v21 }
 0xece   :  { %4283 = vmatprep.subr.mxu0 %v1855_v4 }
 0xecf   :  { %4284 = vmatpush3.msra.mxu0 %v1855_v4 }
 0xf80   :  { %v4257_v23 = vpop.f32.mrf.mxu0 }
 0xf81   :  { %v3379_v22 = vadd.f32 %v4257_v23, %v3300_v19 }
 0xf82   :  { %v3373_v26 = vpop.f32.mrf.mxu0 }
 0xf83   :  { %v3374_v27 = vadd.f32 %v3373_v26, %v3300_v19  ;;  %v3383_v28 = vadd.f32 %v3379_v22, %v4751_v30 }
 0xf85   :  { %v3387_v32 = vsel %vm71_vm0, %v3383_v28, 0.0  ;;  %v3382_v13 = vadd.f32 %v3374_v27, %v4749_v29  ;;  %v1853_v29 = vld [vmem:[#allocation5 + $0x108] sm:$0xff] }
 0xf86   :  { %3388 = vadd.xlane.f32.xlu1 %v3387_v32  ;;  %4260 = vmatprep.subr.mxu1 %v1853_v29 }
 0xf87   :  { %v3384_v33 = vsel %vm71_vm0, %v3382_v13, 0.0  ;;  %4261 = vmatpush3.msra.mxu1 %v1853_v29 }
 0xf88   :  { %3385 = vadd.xlane.f32.xlu0 %v3384_v33  ;;  %4262 = vmatprep.subr.mxu1 %v1852_v49 }
 0xf89   :  { %4263 = vmatpush3.msra.mxu1 %v1852_v49 }
 0xf8a   :  { %4264 = vmatprep.subr.mxu1 %v1851_v25 }
 0xf8b   :  { %4265 = vmatpush3.msra.mxu1 %v1851_v25 }
 0xf8c   :  { %4288 = vmatprep.subr.mxu1 %v4470_v16 }
0x100f   :  { %v3389_v34 = vpop.xlane.xlu1 %3388 }
0x1010   :  { %v3391_v36 = vmul.f32 0.03125, %v3389_v34 }
0x1011   :  { %v3386_v35 = vpop.xlane.xlu0 %3385 }
0x1012   :  { %v3390_v37 = vmul.f32 0.03125, %v3386_v35  ;;  %v3393_v40 = vsub.f32 %v3383_v28, %v3391_v36 }
0x1014   :  { %v3392_v41 = vsub.f32 %v3382_v13, %v3390_v37  ;;  %v3395_v45 = vmul.f32 %v3393_v40, %v3393_v40 }
0x1016   :  { %v3394_v42 = vmul.f32 %v3392_v41, %v3392_v41  ;;  %v3399_v30 = vsel %vm71_vm0, %v3395_v45, 0.0  ;;  %v3636_v45 = vld [vmem:[#allocation5 + $0x170] sm:$0xff] }
0x1018   :  { %v3396_v44 = vsel %vm71_vm0, %v3394_v42, 0.0 }
0x1019   :  { %3397 = vadd.xlane.f32.xlu0 %v3396_v44  ;;  %v3637_v44 = vld [vmem:[#allocation5 + $0x178] sm:$0xff] }
0x101d   :  { %3400 = vadd.xlane.f32.xlu0 %v3399_v30  ;;  %v3635_v30 = vld [vmem:[#allocation5 + $0x168] sm:$0xff] }
0x10a2   :  { %v3398_v53 = vpop.xlane.xlu0 %3397 }
0x10a3   :  { %v3402_v54 = vmul.f32 0.03125, %v3398_v53 }
0x10a5   :  { %v3404_v55 = vadd.f32 1e-05, %v3402_v54  ;;  %v3631_v54 = vrot.slane %v4759_v31, %v1839_v18 }
0x10a6   :  { %v3401_v56 = vpop.xlane.xlu0 %3400 }
0x10a7   :  { %4392 = vrsqrt.f32 %v3404_v55  ;;  %v3403_v57 = vmul.f32 0.03125, %v3401_v56 }
0x10a9   :  { %v3405_v58 = vadd.f32 1e-05, %v3403_v57 }
0x10ab   :  { %4394 = vrsqrt.f32 %v3405_v58 }
0x10b4   :  { %v4393_v60 = vpop.eup %4392 }
0x10b5   :  { %v3408_v61 = vmul.f32 %v4393_v60, %v3392_v41 }
0x10b7   :  { %v3414_v63 = vmul.f32 %v3413_v59, %v3408_v61 }
0x10b8   :  { %v4395_v0 = vpop.eup %4394 }
0x10b9   :  { %v3409_v9 = vmul.f32 %v4395_v0, %v3393_v40  ;;  %v3420_v1 = vadd.f32 %v3419_v62, %v3414_v63 }
0x10bb   :  { %v3415_v5 = vmul.f32 %v3413_v59, %v3409_v9  ;;  %4266 = vmatprep.mubr.msk.f32.mxu1 %vm71_vm0, %v3420_v1 }
0x10bd   :  { %v3421_v2 = vadd.f32 %v3419_v62, %v3415_v5 }
0x10bf   :  { %4267 = vmatmul.mubr.msk.f32.vlgmr.msra.gmra.mxu1 %vm71_vm0, %v3421_v2 }
0x10c0   :  { %4296 = vmatprep.mubr.msk.f32.mxu1 %vm4473_vm1, %v4470_v16  ;;  %4289 = vmatpush3.msra.mxu1 %v3637_v44 }
0x10c1   :  { %4290 = vmatprep.subr.mxu1 %v4470_v16 }
0x10c2   :  { %4291 = vmatpush3.msra.mxu1 %v3636_v45 }
0x10c3   :  { %4292 = vmatprep.subr.mxu1 %v4470_v16 }
0x10c4   :  { %4293 = vmatpush3.msra.mxu1 %v3635_v30 }
0x10c5   :  { %4294 = vmatprep.subr.mxu1 %v4470_v16 }
0x10c6   :  { %4295 = vmatpush3.msra.mxu1 %v3634_v47 }
0x10c7   :  { %4299 = vmatprep.subr.mxu1 %v4470_v16 }
0x117f   :  { %v4268_v7 = vpop.f32.mrf.mxu1 }
0x1180   :  { %v3504_v8 = vadd.f32 %v4268_v7, %v3425_v6  ;;  %v3639_v7 = vld [vmem:[#allocation5 + $0x188] sm:$0xff] }
0x1181   :  { %v3498_v43 = vpop.f32.mrf.mxu1 }
0x1182   :  { %v3499_v10 = vadd.f32 %v3498_v43, %v3425_v6  ;;  %v3508_v39 = vmax.f32 %v3504_v8, 0.0  ;;  %v3638_v8 = vld [vmem:[#allocation5 + $0x180] sm:$0xff]  ;;  %v3640_v43 = vld [vmem:[#allocation5 + $0x190] sm:$0x3] }
0x1184   :  { %v3507_v15 = vmax.f32 %v3499_v10, 0.0  ;;  %v3661_v10 = vrot.slane %v3640_v43, %v4514_v12 }
0x1186   :  { %4285 = vmatprep.mubr.msk.f32.mxu0 %vm1721_vm5, %v3507_v15 }
0x1187   :  { %4286 = vmatmul.mubr.msk.f32.vlgmr.msra.gmra.mxu0 %vm1721_vm5, %v3508_v39 }
0x1247   :  { %v4287_v19 = vpop.f32.mrf.mxu0 }
0x1248   :  { %v3591_v23 = vadd.f32 %v4287_v19, %v3512_v17 }
0x1249   :  { %v3585_v22 = vpop.f32.mrf.mxu0 }
0x124a   :  { %v3595_v26 = vadd.f32 %v3591_v23, %v3421_v2  ;;  %v3586_v27 = vadd.f32 %v3585_v22, %v3512_v17  ;;  %v3739_v23 = vrot.slane %v3640_v43, %v4703_v48 }
0x124c   :  { %v3594_v38 = vadd.f32 %v3586_v27, %v3420_v1  ;;  %v3599_v28 = vsel %vm71_vm0, %v3595_v26, 0.0 }
0x124d   :  { %3600 = vadd.xlane.f32.xlu0 %v3599_v28 }
0x124e   :  { %v3596_v32 = vsel %vm71_vm0, %v3594_v38, 0.0 }
0x124f   :  { %3597 = vadd.xlane.f32.xlu1 %v3596_v32 }
0x12d6   :  { %v3601_v13 = vpop.xlane.xlu0 %3600 }
0x12d7   :  { %v3603_v33 = vmul.f32 0.03125, %v3601_v13 }
0x12d8   :  { %v3598_v34 = vpop.xlane.xlu1 %3597 }
0x12d9   :  { %v3605_v36 = vsub.f32 %v3595_v26, %v3603_v33  ;;  %v3602_v35 = vmul.f32 0.03125, %v3598_v34 }
0x12db   :  { %v3604_v37 = vsub.f32 %v3594_v38, %v3602_v35  ;;  %v3607_v40 = vmul.f32 %v3605_v36, %v3605_v36 }
0x12dd   :  { %v3611_v46 = vsel %vm71_vm0, %v3607_v40, 0.0  ;;  %v3606_v41 = vmul.f32 %v3604_v37, %v3604_v37 }
0x12de   :  { %3612 = vadd.xlane.f32.xlu0 %v3611_v46 }
0x12df   :  { %v3608_v42 = vsel %vm71_vm0, %v3606_v41, 0.0 }
0x12e0   :  { %3609 = vadd.xlane.f32.xlu1 %v3608_v42 }
0x1367   :  { %v3613_v29 = vpop.xlane.xlu0 %3612 }
0x1368   :  { %v3615_v49 = vmul.f32 0.03125, %v3613_v29 }
0x1369   :  { %v3610_v25 = vpop.xlane.xlu1 %3609 }
0x136a   :  { %v3617_v50 = vadd.f32 1e-05, %v3615_v49  ;;  %v3614_v24 = vmul.f32 0.03125, %v3610_v25 }
0x136c   :  { %4396 = vrsqrt.f32 %v3617_v50  ;;  %v3616_v51 = vadd.f32 1e-05, %v3614_v24 }
0x136e   :  { %4398 = vrsqrt.f32 %v3616_v51 }
0x1379   :  { %v4397_v53 = vpop.eup %4396 }
0x137a   :  { %v3621_v55 = vmul.f32 %v4397_v53, %v3605_v36 }
0x137b   :  { %v4399_v56 = vpop.eup %4398 }
0x137c   :  { %v3627_v57 = vmul.f32 %v3625_v52, %v3621_v55  ;;  %v3620_v58 = vmul.f32 %v4399_v56, %v3604_v37 }
0x137e   :  { %v3633_v59 = vadd.f32 %v3631_v54, %v3627_v57  ;;  %v3626_v60 = vmul.f32 %v3625_v52, %v3620_v58 }
0x1380   :  { %v3648_v61 = vsel %vm71_vm0, %v3633_v59, 0.0  ;;  %v3632_v62 = vadd.f32 %v3631_v54, %v3626_v60 }
0x1381   :  { %v3649_v63 = vrot.slane %v3648_v61, 4 }
0x1382   :  { %v3641_v0 = vsel %vm71_vm0, %v3632_v62, 0.0 }
0x1383   :  { %v3642_v9 = vrot.slane %v3641_v0, 4  ;;  %v3650_v1 = vadd.f32 %v3649_v63, %v3648_v61 }
0x1385   :  { %v3643_v14 = vadd.f32 %v3642_v9, %v3641_v0  ;;  %v3651_v5 = vrot.slane %v3650_v1, 2 }
0x1387   :  { %v3644_v2 = vrot.slane %v3643_v14, 2  ;;  %v3652_v11 = vadd.f32 %v3651_v5, %v3650_v1 }
0x1389   :  { %v3645_v20 = vadd.f32 %v3644_v2, %v3643_v14  ;;  %v3653_v18 = vrot.slane %v3652_v11, 1 }
0x138b   :  { %v3646_v31 = vrot.slane %v3645_v20, 1  ;;  %v3654_v21 = vadd.f32 %v3653_v18, %v3652_v11 }
0x138d   :  { %v3647_v3 = vadd.f32 %v3646_v31, %v3645_v20 }
0x138f   :  { %v3656_v4 = vsel %vm3655_vm6, %v3647_v3, %v3654_v21 }
0x1390   :  { %v3657_v6 = vmul.f32 0.125, %v3656_v4 }
0x1392   :  { %4297 = vmatmul.mubr.msk.f32.vlgmr.msra.gmra.mxu1 %vm71_vm0, %v3657_v6 }
0x1393   :  { %4303 = vmatprep.mubr.msk.f32.mxu1 %vm4473_vm1, %v4470_v16  ;;  %4300 = vmatpush3.msra.mxu1 %v3639_v7 }
0x1394   :  { %4301 = vmatprep.subr.mxu1 %v4470_v16 }
0x1395   :  { %4302 = vmatpush3.msra.mxu1 %v3638_v8 }
0x1452   :  { %v3731_v15 = vpop.f32.mrf.mxu1 }
0x1453   :  { %v3732_v39 = vadd.f32 %v3731_v15, %v3661_v10 }
0x1454   :  { %v4298_v17 = vpop.f32.mrf.mxu1 }
0x1455   :  { %v3735_v19 = vmax.f32 %v3732_v39, 0.0 }
0x1457   :  { %4304 = vmatmul.mubr.msk.f32.vlgmr.msra.gmra.mxu1 %vm1485_vm3, %v3735_v19 }
0x1517   :  { %v3809_v22 = vpop.f32.mrf.mxu1 }
0x1518   :  { %v3810_v26 = vadd.f32 %v3809_v22, %v3739_v23 }
0x1519   :  { %v4305_v27 = vpop.f32.mrf.mxu1 }
0x151a   :  { %3813 = vst [vmem:[#allocation7] sm:$0x3] %v3810_v26 }
0x151b   :  { %4451 = shalt.err (!%p4448_p0)
}
0x151c   :  { %3823 = dma.vmem_to_hbm [thread:$0]  %s3821_s27, 32, %s4994_s2, [#allocation4]  }
0x151d   :  { %4464 = dma.done.wait [#allocation4], 32  }
0x151e   :  { %4465 = vsyncadd [#allocation4], 4294967264 }
0x151f   :  { %3827 = vsyncpa [#allocation3], 1 }
0x1520   :  { %3828 = vsyncpa [#allocation6], 1 }
0x1521   :  { %3829 = vsyncpa [#allocation4], 1 }

</bundles_post_ra>
